<compile_context>
chip_gen: v7x
topology: tpu7x:2x2x1
jax: 0.10.0
libtpu: 0.0.40
codegen_flags: <defaults>
</compile_context>

<pallas_src>
import math

import jax
import jax.numpy as jnp
from jax.experimental import pallas as pl
from jax.experimental.pallas import tpu as pltpu


def _leaky_relu(x, negative_slope=0.2):
    return jnp.where(x >= 0, x, negative_slope * x)


def generator_kernel(x_ref, w1_ref, b1_ref, w2_ref, b2_ref, w3_ref, b3_ref,
                     out_ref):
    """Fused 3-layer MLP forward for one (TM, latent) batch tile."""
    hp = jax.lax.Precision.HIGHEST

    x = x_ref[...]                                            # (TM, L)

    h = jnp.dot(x, w1_ref[...], preferred_element_type=jnp.float32,
                precision=hp)
    h = _leaky_relu(h + b1_ref[...])                          # (TM, H)

    h = jnp.dot(h, w2_ref[...], preferred_element_type=jnp.float32,
                precision=hp)
    h = _leaky_relu(h + b2_ref[...])                          # (TM, H)

    logits = jnp.dot(h, w3_ref[...], preferred_element_type=jnp.float32,
                     precision=hp)
    logits = logits + b3_ref[...]                             # (TM, O)

    out_ref[...] = jax.nn.sigmoid(logits).astype(out_ref.dtype)


def _round_up(n, m):
    return ((n + m - 1) // m) * m


def _choose_batch_tile(B, tm):
    """Pick a sublane-aligned (multiple-of-8) batch tile.

    Preference:
      1. a multiple of 8 that divides B exactly  -> B_pad == B, zero wrapper copies;
      2. otherwise the largest multiple of 8 <= target, with the ragged tail padded.
    The tile is also capped near B/2 so the grid has >= 2 steps and the
    "parallel" batch axis can shard across both v7x TensorCores.
    """
    target = min(tm, max(B, 8))
    if B >= 16:
        target = min(target, _round_up(pl.cdiv(B, 2), 8))   # guarantee >= 2 grid steps
    target = max(8, (target // 8) * 8)

    for cand in range(target, 7, -8):                        # largest divisor of B
        if B % cand == 0:
            return cand, B
    return target, _round_up(B, target)                      # ragged fallback: pad


def generator_forward(x, params, *, tm=2048, out_dtype=jnp.float32):
    """x: (B, latent_dim) float32 -> (B, 1, 28, 28)."""
    w1, b1, w2, b2, w3, b3 = params
    B, L = x.shape
    O = w3.shape[1]

    tm_eff, B_pad = _choose_batch_tile(B, tm)
    xp = jnp.pad(x, ((0, B_pad - B), (0, 0))) if B_pad != B else x
    grid = (B_pad // tm_eff,)

    # --- VMEM budget: resident weights (single-buffered) + double-buffered
    #     x/out tiles, with headroom; capped conservatively for v7x (64 MiB/TC).
    f32_bytes = jnp.dtype(jnp.float32).itemsize
    out_bytes = jnp.dtype(out_dtype).itemsize
    weight_bytes = sum(int(a.size) * f32_bytes for a in (w1, b1, w2, b2, w3, b3))
    tile_bytes = 2 * (tm_eff * L * f32_bytes) + 2 * (tm_eff * O * out_bytes)
    vmem_limit = int(1.5 * (weight_bytes + tile_bytes)) + (4 << 20)
    vmem_limit = max(8 << 20, min(vmem_limit, 40 << 20))

    resident = dict(pipeline_mode=pl.Buffered(1))  # constant index map: one buffer

    out = pl.pallas_call(
        generator_kernel,
        out_shape=jax.ShapeDtypeStruct((B_pad, O), out_dtype),
        grid=grid,
        in_specs=[
            pl.BlockSpec((tm_eff, L), lambda i: (i, 0)),       # x: tiled on batch
            pl.BlockSpec(w1.shape, lambda i: (0, 0), **resident),
            pl.BlockSpec(b1.shape, lambda i: (0, 0), **resident),
            pl.BlockSpec(w2.shape, lambda i: (0, 0), **resident),
            pl.BlockSpec(b2.shape, lambda i: (0, 0), **resident),
            pl.BlockSpec(w3.shape, lambda i: (0, 0), **resident),
            pl.BlockSpec(b3.shape, lambda i: (0, 0), **resident),
        ],
        out_specs=pl.BlockSpec((tm_eff, O), lambda i: (i, 0)),  # true-width store
        compiler_params=pltpu.CompilerParams(
            dimension_semantics=("parallel",),
            vmem_limit_bytes=vmem_limit,
        ),
    )(xp, w1, b1, w2, b2, w3, b3)

    if B_pad != B:          # only on the ragged-B fallback path
        out = out[:B]
    # TODO(synk): TPU-side consumers should take the flat (B, 784) output and fold
    # the NCHW view in themselves to avoid the 28-wide-lane relayout copy.
    return out.reshape(-1, 1, 28, 28)


def init_generator_params(key, latent_dim, hidden_dim, output_dim):
    """Deterministic init mimicking PyTorch nn.Linear default:
       U(-1/sqrt(fan_in), 1/sqrt(fan_in)) for both weight and bias."""
    keys = jax.random.split(key, 6)

    def linear(kw, kb, fan_in, fan_out):
        bound = 1.0 / math.sqrt(fan_in)
        w = jax.random.uniform(kw, (fan_in, fan_out), jnp.float32,
                               minval=-bound, maxval=bound)
        # bias kept 2D (1, fan_out) for clean TPU broadcasting inside the kernel
        b = jax.random.uniform(kb, (1, fan_out), jnp.float32,
                               minval=-bound, maxval=bound)
        return w, b

    w1, b1 = linear(keys[0], keys[1], latent_dim, hidden_dim)
    w2, b2 = linear(keys[2], keys[3], hidden_dim, hidden_dim)
    w3, b3 = linear(keys[4], keys[5], hidden_dim, output_dim)
    return (w1, b1, w2, b2, w3, b3)


def _reference_forward(x, params):
    """Pure-JAX reference (same f32 precision) for correctness checking."""
    w1, b1, w2, b2, w3, b3 = params
    hp = jax.lax.Precision.HIGHEST
    h = _leaky_relu(jnp.dot(x, w1, precision=hp) + b1)
    h = _leaky_relu(jnp.dot(h, w2, precision=hp) + b2)
    out = jax.nn.sigmoid(jnp.dot(h, w3, precision=hp) + b3)
    return out.reshape(-1, 1, 28, 28)


if __name__ == "__main__":
    latent_dim = 32
    hidden_dim = 64
    output_dim = 28 * 28   # forward reshapes to (-1, 1, 28, 28)
    batch = 16             # tile chooser picks tm_eff=8 -> 2-step grid, no padding

    key = jax.random.PRNGKey(0)
    k_params, k_x = jax.random.split(key)

    params = init_generator_params(k_params, latent_dim, hidden_dim, output_dim)
    x = jax.random.normal(k_x, (batch, latent_dim), jnp.float32)

    y = jax.block_until_ready(generator_forward(x, params))
    assert y.shape == (batch, 1, 28, 28), y.shape

    y_ref = jax.block_until_ready(_reference_forward(x, params))
    assert jnp.allclose(y, y_ref, atol=1e-5, rtol=1e-5), \
        float(jnp.max(jnp.abs(y - y_ref)))

    print("KERNEL_OK")
</pallas_src>

<mosaic_0001>
module attributes {stable_mosaic.version = 11 : i64} {
  func.func @generator_kernel(%arg0: i32, %arg1: memref<8x32xf32, #tpu.memory_space<vmem>>, %arg2: memref<32x64xf32, #tpu.memory_space<vmem>>, %arg3: memref<1x64xf32, #tpu.memory_space<vmem>>, %arg4: memref<64x64xf32, #tpu.memory_space<vmem>>, %arg5: memref<1x64xf32, #tpu.memory_space<vmem>>, %arg6: memref<64x784xf32, #tpu.memory_space<vmem>>, %arg7: memref<1x784xf32, #tpu.memory_space<vmem>>, %arg8: memref<8x784xf32, #tpu.memory_space<vmem>>) attributes {dimension_semantics = [#tpu.dimension_semantics<parallel>], iteration_bounds = array<i64: 2>, scalar_prefetch = 0 : i64, scratch_operands = 0 : i64, tpu.core_type = #tpu.core_type<tc>, window_params = [{transform_indices = @transform_0, window_bounds = array<i64: 8, 32>}, {pipeline_mode = #tpu.pipeline_mode<synchronous>, transform_indices = @transform_1, window_bounds = array<i64: 32, 64>}, {pipeline_mode = #tpu.pipeline_mode<synchronous>, transform_indices = @transform_2, window_bounds = array<i64: 1, 64>}, {pipeline_mode = #tpu.pipeline_mode<synchronous>, transform_indices = @transform_3, window_bounds = array<i64: 64, 64>}, {pipeline_mode = #tpu.pipeline_mode<synchronous>, transform_indices = @transform_4, window_bounds = array<i64: 1, 64>}, {pipeline_mode = #tpu.pipeline_mode<synchronous>, transform_indices = @transform_5, window_bounds = array<i64: 64, 784>}, {pipeline_mode = #tpu.pipeline_mode<synchronous>, transform_indices = @transform_6, window_bounds = array<i64: 1, 784>}, {transform_indices = @transform_7, window_bounds = array<i64: 8, 784>}]} {
    %c0 = arith.constant 0 : index
    %c0_0 = arith.constant 0 : index
    %0 = vector.load %arg1[%c0, %c0_0] : memref<8x32xf32, #tpu.memory_space<vmem>>, vector<8x32xf32>
    %c0_1 = arith.constant 0 : index
    %c0_2 = arith.constant 0 : index
    %1 = vector.load %arg2[%c0_1, %c0_2] : memref<32x64xf32, #tpu.memory_space<vmem>>, vector<32x64xf32>
    %cst = arith.constant dense<0.000000e+00> : vector<8x64xf32>
    %2 = tpu.matmul %0, %1, %cst {dimension_numbers = #tpu.dot_dimension_numbers<[1], [0], [0], [1], [0, 0, 1, 1], [], []>, precision = #tpu.contract_precision<fp32>} : vector<8x32xf32>, vector<32x64xf32>, vector<8x64xf32> -> vector<8x64xf32>
    %c0_3 = arith.constant 0 : index
    %c0_4 = arith.constant 0 : index
    %3 = vector.load %arg3[%c0_3, %c0_4] : memref<1x64xf32, #tpu.memory_space<vmem>>, vector<1x64xf32>
    %4 = vector.broadcast %3 : vector<1x64xf32> to vector<8x64xf32>
    %5 = arith.addf %2, %4 : vector<8x64xf32>
    %cst_5 = arith.constant 0.000000e+00 : f32
    %6 = vector.broadcast %cst_5 : f32 to vector<8x64xf32>
    %7 = arith.cmpf oge, %5, %6 : vector<8x64xf32>
    %cst_6 = arith.constant 2.000000e-01 : f32
    %8 = vector.broadcast %cst_6 : f32 to vector<8x64xf32>
    %9 = arith.mulf %8, %5 : vector<8x64xf32>
    %10 = arith.select %7, %5, %9 : vector<8x64xi1>, vector<8x64xf32>
    %c0_7 = arith.constant 0 : index
    %c0_8 = arith.constant 0 : index
    %11 = vector.load %arg4[%c0_7, %c0_8] : memref<64x64xf32, #tpu.memory_space<vmem>>, vector<64x64xf32>
    %cst_9 = arith.constant dense<0.000000e+00> : vector<8x64xf32>
    %12 = tpu.matmul %10, %11, %cst_9 {dimension_numbers = #tpu.dot_dimension_numbers<[1], [0], [0], [1], [0, 0, 1, 1], [], []>, precision = #tpu.contract_precision<fp32>} : vector<8x64xf32>, vector<64x64xf32>, vector<8x64xf32> -> vector<8x64xf32>
    %c0_10 = arith.constant 0 : index
    %c0_11 = arith.constant 0 : index
    %13 = vector.load %arg5[%c0_10, %c0_11] : memref<1x64xf32, #tpu.memory_space<vmem>>, vector<1x64xf32>
    %14 = vector.broadcast %13 : vector<1x64xf32> to vector<8x64xf32>
    %15 = arith.addf %12, %14 : vector<8x64xf32>
    %cst_12 = arith.constant 0.000000e+00 : f32
    %16 = vector.broadcast %cst_12 : f32 to vector<8x64xf32>
    %17 = arith.cmpf oge, %15, %16 : vector<8x64xf32>
    %cst_13 = arith.constant 2.000000e-01 : f32
    %18 = vector.broadcast %cst_13 : f32 to vector<8x64xf32>
    %19 = arith.mulf %18, %15 : vector<8x64xf32>
    %20 = arith.select %17, %15, %19 : vector<8x64xi1>, vector<8x64xf32>
    %c0_14 = arith.constant 0 : index
    %c0_15 = arith.constant 0 : index
    %21 = vector.load %arg6[%c0_14, %c0_15] : memref<64x784xf32, #tpu.memory_space<vmem>>, vector<64x784xf32>
    %cst_16 = arith.constant dense<0.000000e+00> : vector<8x784xf32>
    %22 = tpu.matmul %20, %21, %cst_16 {dimension_numbers = #tpu.dot_dimension_numbers<[1], [0], [0], [1], [0, 0, 1, 1], [], []>, precision = #tpu.contract_precision<fp32>} : vector<8x64xf32>, vector<64x784xf32>, vector<8x784xf32> -> vector<8x784xf32>
    %c0_17 = arith.constant 0 : index
    %c0_18 = arith.constant 0 : index
    %23 = vector.load %arg7[%c0_17, %c0_18] : memref<1x784xf32, #tpu.memory_space<vmem>>, vector<1x784xf32>
    %24 = vector.broadcast %23 : vector<1x784xf32> to vector<8x784xf32>
    %25 = arith.addf %22, %24 : vector<8x784xf32>
    %26 = arith.negf %25 : vector<8x784xf32>
    %27 = math.exp %26 : vector<8x784xf32>
    %cst_19 = arith.constant 1.000000e+00 : f32
    %28 = vector.broadcast %cst_19 : f32 to vector<8x784xf32>
    %29 = arith.addf %28, %27 : vector<8x784xf32>
    %30 = arith.divf %28, %29 : vector<8x784xf32>
    %c0_20 = arith.constant 0 : index
    %c0_21 = arith.constant 0 : index
    %31 = vector.load %arg8[%c0_20, %c0_21] : memref<8x784xf32, #tpu.memory_space<vmem>>, vector<8x784xf32>
    tpu.vector_store %arg8[%c0_20, %c0_21], %30 {strides = array<i32>} : memref<8x784xf32, #tpu.memory_space<vmem>>, vector<8x784xf32>,
    return
  }
  func.func @transform_0(%arg0: i32) -> (i32, i32) {
    %c0_i32 = arith.constant 0 : i32
    %c0_i32_0 = arith.constant 0 : i32
    return %arg0, %c0_i32 : i32, i32
  }
  func.func @transform_1(%arg0: i32) -> (i32, i32) {
    %c0_i32 = arith.constant 0 : i32
    %c0_i32_0 = arith.constant 0 : i32
    %c0_i32_1 = arith.constant 0 : i32
    return %c0_i32, %c0_i32_0 : i32, i32
  }
  func.func @transform_2(%arg0: i32) -> (i32, i32) {
    %c0_i32 = arith.constant 0 : i32
    %c0_i32_0 = arith.constant 0 : i32
    %c0_i32_1 = arith.constant 0 : i32
    return %c0_i32, %c0_i32_0 : i32, i32
  }
  func.func @transform_3(%arg0: i32) -> (i32, i32) {
    %c0_i32 = arith.constant 0 : i32
    %c0_i32_0 = arith.constant 0 : i32
    %c0_i32_1 = arith.constant 0 : i32
    return %c0_i32, %c0_i32_0 : i32, i32
  }
  func.func @transform_4(%arg0: i32) -> (i32, i32) {
    %c0_i32 = arith.constant 0 : i32
    %c0_i32_0 = arith.constant 0 : i32
    %c0_i32_1 = arith.constant 0 : i32
    return %c0_i32, %c0_i32_0 : i32, i32
  }
  func.func @transform_5(%arg0: i32) -> (i32, i32) {
    %c0_i32 = arith.constant 0 : i32
    %c0_i32_0 = arith.constant 0 : i32
    %c0_i32_1 = arith.constant 0 : i32
    return %c0_i32, %c0_i32_0 : i32, i32
  }
  func.func @transform_6(%arg0: i32) -> (i32, i32) {
    %c0_i32 = arith.constant 0 : i32
    %c0_i32_0 = arith.constant 0 : i32
    %c0_i32_1 = arith.constant 0 : i32
    return %c0_i32, %c0_i32_0 : i32, i32
  }
  func.func @transform_7(%arg0: i32) -> (i32, i32) {
    %c0_i32 = arith.constant 0 : i32
    %c0_i32_0 = arith.constant 0 : i32
    return %arg0, %c0_i32 : i32, i32
  }
}

</mosaic_0001>

<bundles_post_ra>
// kernel: tpu_custom_call.1
= control target key start
LH: loop header
LB: loop body
LE: loop exit
PB: predicated region body
PF: predicated region fallthrough
CT: control target
= control target key end

     0   :  { %12 = vsyncpa [#allocation3], 0  ;;  %s6817_s0 = inlined_call_operand.hbm [shape: f32[16,32], index: 0, kind: input, shape index: {}]   ;;  %s6818_s1 = inlined_call_operand.hbm [shape: f32[32,64], index: 1, kind: input, shape index: {}]   ;;  %s6819_s2 = inlined_call_operand.vmem [shape: f32[1,64], index: 2, kind: input, shape index: {}]   ;;  %s6820_s3 = inlined_call_operand.hbm [shape: f32[64,64], index: 3, kind: input, shape index: {}]   ;;  %s6821_s4 = inlined_call_operand.vmem [shape: f32[1,64], index: 4, kind: input, shape index: {}]   ;;  %s6822_s5 = inlined_call_operand.hbm [shape: f32[64,784], index: 5, kind: input, shape index: {}]   ;;  %s6823_s6 = inlined_call_operand.vmem [shape: f32[1,784], index: 6, kind: input, shape index: {}]   ;;  %s6824_s7 = inlined_call_operand.hbm [shape: f32[16,784], index: 7, kind: output, shape index: {}]  }
   0x1   :  { %14 = vsyncpa [#allocation3 + $0x1], 0 }
   0x2   :  { %15 = vsyncpa [#allocation6], 0 }
   0x3   :  { %16 = vsyncpa [#allocation9], 0 }
   0x4   :  { %17 = vsyncpa [#allocation4], 0 }
   0x5   :  { %19 = vsyncpa [#allocation4 + $0x1], 0  ;;  %s5488_s24 = smov 0   ;;  %s5490_s25 = smov 0  }
   0x6   :  { %s5492_s26 = smov 0   ;;  %s5494_s27 = smov 0  }
   0x7 LB: > { %s5509_s28 = sadd.s32 4294967295, %s5434_s27   ;;  %s4139_s29 = sadd.s32 4294967294, %s5434_s27   ;;  %s5434_s27 = sphi %s5494_s27, %s7076_s27   ;;  %s5430_s26 = sphi %s5492_s26, %s7075_s26   ;;  %s5426_s25 = sphi %s5490_s25, %s7074_s25   ;;  %s5422_s24 = sphi %s5488_s24, %s7073_s24  }
   0x8   : > { %p45_p0 = scmp.ne.s32.totalorder %s5426_s25, %s5422_s24  ;;  %p6825_p1 = scmp.eq.s32.totalorder %s5509_s28, 0 }
   0x9   : > { %p201_p3 = scmp.eq.s32.totalorder %s4139_s29, 1  ;;  %p4140_p5 = scmp.ge.s32.totalorder %s5434_s27, 1 }
   0xa   : > { %p5518_p4 = por %p6825_p1, %p45_p0  ;;  %p208_p7 = scmp.lt.s32.totalorder %s5434_s27, 3 }
   0xb   : > { %p5523_p6 = por %p201_p3, %p45_p0  ;;  %s5436_s10 = smov [#allocation5]  }
   0xc   : > { %s6912_s30 = scalar_select %p5518_p4, 1, 0 }
   0xd   : > { %s6913_s8 = scalar_select %p5523_p6, 1, 0 }
   0xe   : > { %p5528_p8 = pnand %p4140_p5, %p208_p7  ;;  %s220_s11 = sshll.u32 %s5436_s10, 4  ;;  %s5532_s11 = int_to_ptr.vmem [resolvable:$true] %s220_s11 }
   0xf   : > { %6914 = sst [smem:[#allocation15_spill]] %s6913_s8  ;;  %s5437_s13 = smov [#allocation7]  }
  0x10   : > { %s6915_s9 = scalar_select %p5528_p8, 1, 0 }
  0x11   : > { %p5150_p9 = pneg %p5528_p8  ;;  %s236_s14 = sshll.u32 %s5437_s13, 4  ;;  %s5543_s14 = int_to_ptr.vmem [resolvable:$true] %s236_s14 }
  0x12   : > { %s5438_s15 = smov [#allocation8]   ;;  %s5246_s19 = scalar_lea.hbm %s6818_s1, 512 }
  0x13   : > { %p5539_p11 = pnand %p5150_p9, %p6825_p1  ;;  %s5545_s16 = sshll.u32 %s5438_s15, 4  ;;  %s253_s16 = int_to_ptr.vmem [resolvable:$true] %s5545_s16 }
  0x14   : > { %p5247_p12 = scmp.ne.s32.totalorder %s6818_s1, %s5246_s19  ;;  %p5253_p5 = scmp.lt.u32.totalorder %s5246_s19, %s6818_s1 }
  0x15   : > { %p5555_p13 = pneg %p5539_p11 }
  0x17   : > { %p5249_p0 = pnand %p5555_p13, %p5247_p12 }
  0x19   : > { %p5250_p3 = pneg %p5249_p0 }
  0x1b   : > { %p5255_p7 = pnand %p5253_p5, %p5250_p3 }
  0x1d   : > { %5258 = shalt.err (!%p5255_p7)
}
  0x1e   : > { %s5259_s10 = scalar_lea.vmem %s5532_s11, 512  ;;  %p5267_p2 = scmp.lt.s32.totalorder %s5532_s11, %s5532_s11 }
  0x1f   : > { %p5260_p9 = scmp.ne.s32.totalorder %s5532_s11, %s5259_s10  ;;  %p5268_p6 = scmp.lt.s32.totalorder %s5259_s10, %s5259_s10 }
  0x21   : > { %p5262_p10 = pnand %p5260_p9, %p5555_p13  ;;  %p5269_p12 = por %p5268_p6, %p5267_p2 }
  0x23   : > { %p5263_p1 = pneg %p5262_p10 }
  0x25   : > { %p5270_p0 = pnand %p5269_p12, %p5263_p1 }
  0x27   : > { %5273 = shalt.err (!%p5270_p0)
}
  0x28   : > { %s5439_s13 = smov 128   ;;  %s5440_s15 = smov 8  }
  0x29   : > { %5153 = dma.hbm_to_vmem [thread:$0]  (!%p5539_p11), %s6818_s1, 512, %s5532_s11, [#allocation6], %s5439_s13, %s5439_s13, %s5440_s15  }
  0x2a   : > { %s5274_s21 = scalar_lea.hbm %s6820_s3, 1024 }
  0x2b   : > { %p5275_p2 = scmp.ne.s32.totalorder %s6820_s3, %s5274_s21  ;;  %p5281_p10 = scmp.lt.u32.totalorder %s5274_s21, %s6820_s3 }
  0x2d   : > { %p5277_p1 = pnand %p5275_p2, %p5555_p13 }
  0x2f   : > { %p5278_p6 = pneg %p5277_p1 }
  0x31   : > { %p5283_p3 = pnand %p5281_p10, %p5278_p6 }
  0x33   : > { %5286 = shalt.err (!%p5283_p3)
}
  0x34   : > { %s5287_s11 = scalar_lea.vmem %s5543_s14, 1024  ;;  %p5295_p12 = scmp.lt.s32.totalorder %s5543_s14, %s5543_s14 }
  0x35   : > { %p5288_p5 = scmp.ne.s32.totalorder %s5543_s14, %s5287_s11  ;;  %p5296_p0 = scmp.lt.s32.totalorder %s5287_s11, %s5287_s11 }
  0x37   : > { %p5290_p7 = pnand %p5288_p5, %p5555_p13  ;;  %p5297_p2 = por %p5296_p0, %p5295_p12 }
  0x39   : > { %p5291_p9 = pneg %p5290_p7 }
  0x3b   : > { %p5298_p1 = pnand %p5297_p2, %p5291_p9 }
  0x3d   : > { %5301 = shalt.err (!%p5298_p1)
}
  0x3e   : > { %5156 = dma.hbm_to_vmem [thread:$0]  (!%p5539_p11), %s6820_s3, 1024, %s5543_s14, [#allocation6], %s5439_s13, %s5439_s13, %s5440_s15  }
  0x3f   : > { %s5302_s20 = scalar_lea.hbm %s6822_s5, 7168 }
  0x40   : > { %p5303_p6 = scmp.ne.s32.totalorder %s6822_s5, %s5302_s20  ;;  %p5309_p5 = scmp.lt.u32.totalorder %s5302_s20, %s6822_s5 }
  0x42   : > { %p5305_p10 = pnand %p5303_p6, %p5555_p13 }
  0x44   : > { %p5306_p3 = pneg %p5305_p10 }
  0x46   : > { %p5311_p7 = pnand %p5309_p5, %p5306_p3 }
  0x48   : > { %5314 = shalt.err (!%p5311_p7)
}
  0x49   : > { %s5315_s11 = scalar_lea.vmem %s253_s16, 7168  ;;  %p5323_p2 = scmp.lt.s32.totalorder %s253_s16, %s253_s16 }
  0x4a   : > { %p5316_p9 = scmp.ne.s32.totalorder %s253_s16, %s5315_s11  ;;  %p5324_p1 = scmp.lt.s32.totalorder %s5315_s11, %s5315_s11 }
  0x4c   : > { %p5318_p12 = pnand %p5316_p9, %p5555_p13  ;;  %p5325_p4 = por %p5324_p1, %p5323_p2 }
  0x4e   : > { %p5319_p0 = pneg %p5318_p12 }
  0x50   : > { %p5326_p8 = pnand %p5325_p4, %p5319_p0 }
  0x52   : > { %5329 = shalt.err (!%p5326_p8)
}
  0x53   : > { %s5441_s14 = smov 896   ;;  %s5442_s22 = smov 56  }
  0x54   : > { %5159 = dma.hbm_to_vmem [thread:$0]  (!%p5539_p11), %s6822_s5, 7168, %s253_s16, [#allocation9], %s5441_s14, %s5441_s14, %s5442_s22  }
  0x55   : > { %s5619_s8 = sadd.s32 1, %s5434_s27   ;;  %s32_s18 = sadd.s32 1, %s5430_s26 }
  0x56   : > { %s29_s17 = ssub.s32 %s5434_s27, %s5619_s8  ;;  %p39_p8 = scmp.ne.s32.totalorder %s5430_s26, %s5426_s25 }
  0x57   : > { %p30_p4 = scmp.eq.s32.totalorder %s29_s17, 0  ;;  %p40_p13 = scmp.eq.s32.totalorder %s5434_s27, 0 }
  0x58   : > { %p5171_p6 = scmp.lt.s32.totalorder %s5434_s27, 2  ;;  %p6918_p3 = scmp.eq.s32.totalorder %s5509_s28, 1 }
  0x59   : > { %s5629_s19 = scalar_select %p30_p4, %s5430_s26, %s32_s18  }
  0x5a   : > { %p41_p10 = por %p40_p13, %p39_p8  ;;  %p5633_p5 = por %p6918_p3, %p39_p8 }
  0x5b   : > { %s269_s12 = sand.u32 1, %s5430_s26   ;;  %s4146_s21 = sshll.u32 %s5434_s27, 7 }
  0x5c   : > { %s4145_s16 = sshll.u32 %s269_s12, 3  ;;  %s5642_s10 = scalar_lea.hbm %s6817_s0, %s4146_s21 }
  0x5d   : > { %s273_s11 = scalar_lea.vmem [#allocation2], %s4145_s16  ;;  %p5644_p11 = pnand %p5171_p6, %p41_p10 }
  0x5e   : > { %s280_s14 = sshll.u32 %s273_s11, 4  ;;  %s270_s13 = scalar_lea.sflag [#allocation3], %s269_s12  ;;  %s5648_s14 = int_to_ptr.vmem [resolvable:$true] %s280_s14 }
  0x5f   : > { %s5330_s15 = scalar_lea.hbm %s5642_s10, 128  ;;  %p5332_p9 = pneg %p5644_p11 }
  0x60   : > { %p5331_p7 = scmp.ne.s32.totalorder %s5642_s10, %s5330_s15  ;;  %s5335_s21 = scalar_lea.hbm %s6817_s0, 256 }
  0x61   : > { %p5336_p2 = scmp.lt.u32.totalorder %s5642_s10, %s6817_s0  ;;  %p5337_p1 = scmp.lt.u32.totalorder %s5335_s21, %s5330_s15 }
  0x62   : > { %p5333_p12 = pnand %p5332_p9, %p5331_p7  ;;  %p5339_p8 = scmp.lt.u32.totalorder %s5330_s15, %s5642_s10 }
  0x63   : > { %p5338_p4 = por %p5337_p1, %p5336_p2 }
  0x64   : > { %p5334_p0 = pneg %p5333_p12 }
  0x65   : > { %p5340_p13 = por %p5339_p8, %p5338_p4 }
  0x67   : > { %p5341_p6 = pnand %p5340_p13, %p5334_p0 }
  0x69   : > { %5344 = shalt.err (!%p5341_p6)
}
  0x6a   : > { %s5345_s12 = scalar_lea.vmem %s5648_s14, 128  ;;  %s5443_s29 = smov [#allocation2]  }
  0x6b   : > { %p5346_p10 = scmp.ne.s32.totalorder %s5648_s14, %s5345_s12  ;;  %s5350_s11 = sshll.u32 %s5443_s29, 4  ;;  %s5351_s11 = int_to_ptr.vmem [resolvable:$false] %s5350_s11 }
  0x6c   : > { %s5352_s17 = scalar_lea.vmem %s5351_s11, 256  ;;  %p5353_p12 = scmp.lt.s32.totalorder %s5648_s14, %s5351_s11 }
  0x6d   : > { %p5348_p3 = pnand %p5346_p10, %p5332_p9  ;;  %p5354_p2 = scmp.lt.s32.totalorder %s5352_s17, %s5345_s12 }
  0x6f   : > { %p5349_p7 = pneg %p5348_p3  ;;  %p5355_p1 = por %p5354_p2, %p5353_p12 }
  0x71   : > { %p5356_p4 = pnand %p5355_p1, %p5349_p7 }
  0x73   : > { %5359 = shalt.err (!%p5356_p4)
}
  0x74   : > { %5163 = dma.hbm_to_vmem [thread:$0]  (!%p5644_p11), %s5642_s10, 128, %s5648_s14, %s270_s13  }
  0x75   : > { %p6921_p0 = scmp.ne.s32.totalorder %s6915_s9, 0 }
  0x77   : > { %289 = sbr.rel (%p6921_p0) target bundleno = 1135 (0x46f), region = 48 }
  0x7e   : > { %s5678_s15 = sand.u32 1, %s5426_s25   ;;  %p6922_p9 = scmp.ne.s32.totalorder %s6912_s30, 0 }
  0x7f   : > { %s4148_s18 = sshll.u32 %s5678_s15, 3  ;;  %s292_s21 = scalar_lea.sflag [#allocation3], %s5678_s15 }
  0x80   : > { %s295_s16 = scalar_lea.vmem [#allocation2], %s4148_s18 }
  0x81   : > { %5405 = dma.done.wait (%p6922_p9), %s292_s21, 128  }
  0x82   : > { %5407 = vsyncadd (%p6922_p9), %s292_s21, 4294967168  ;;  %p6923_p8 = scmp.eq.s32.totalorder %s5509_s28, 0 }
  0x84   : > { %5409 = dma.done.wait (%p6923_p8), [#allocation6], 1536   ;;  %p6924_p11 = pmov %p6923_p8 }
  0x85   : > { %p6925_p13 = pmov %p6923_p8 }
  0x86   : > { %5411 = vsyncadd (%p6924_p11), [#allocation6], 4294965760 }
  0x87   : > { %5413 = dma.done.wait (%p6925_p13), [#allocation9], 7168   ;;  %p6926_p6 = pmov %p6923_p8 }
  0x88   : > { %v6829_v0 = vmov 0.0|0.0   ;;  %vm5445_vm0 = vmmov 0   ;;  %v6831_v1 = vmov 0.0   ;;  %vm350_vm1 = vcmask 261120   ;;  %v339_v2 = vld [vmem:[#allocation5] sm:$0xff]  ;;  %v340_v3 = vld [vmem:[#allocation5 + $0x8] sm:$0xff] }
  0x89   : > { %5415 = vsyncadd (%p6926_p6), [#allocation9], 4294960128  ;;  %4596 = vmatprep.subr.bf16.mxu0 %v6829_v0  ;;  %4310 = vmatprep.mubr.msk.f32.mxu0 %vm5445_vm0, %v6831_v1  ;;  %v341_v4 = vld [vmem:[#allocation5 + $0x10] sm:$0xff]  ;;  %v355_v5 = vand.u32 4294901760, %v339_v2  ;;  %v358_v6 = vand.u32 4294901760, %v340_v3  ;;  %v342_v7 = vld [vmem:[#allocation5 + $0x18] sm:$0xff] }
  0x8a   : > { %4644 = vmatprep.subr.bf16.mxu1 %v6829_v0  ;;  %4403 = vmatprep.mubr.msk.f32.mxu1 %vm5445_vm0, %v6831_v1  ;;  %v361_v8 = vand.u32 4294901760, %v341_v4  ;;  %v338_v9 = vld [vmem:[%s295_s16] sm:$0xff]  ;;  %v5700_v10 = vld [vmem:[#allocation7] sm:$0xff]  ;;  %v364_v11 = vand.u32 4294901760, %v342_v7  ;;  %v5702_v13 = vld [vmem:[#allocation7 + $0x8] sm:$0xff]  ;;  %vm857_vm3 = vcmask 523264  }
  0x8b   : > { %v352_v12 = vsel %vm350_vm1, %v338_v9, 0  ;;  %v862_v14 = vand.u32 4294901760, %v5700_v10  ;;  %v5705_v15 = vpack.c.bf16 %v358_v6, %v355_v5  ;;  %v5707_v16 = vsub.f32 %v339_v2, %v355_v5  ;;  %v5743_v32 = vld [vmem:[#allocation7 + $0x10] sm:$0xff]  ;;  %v5750_v36 = vld [vmem:[#allocation7 + $0x18] sm:$0xff]  ;;  %v846_v5 = vld [vmem:[#allocation7 + $0x20] sm:$0xff]  ;;  %s5132_s23 = smul.u32 56, %s5678_s15 }
  0x8c   : > { %v5709_v17 = vsub.f32 %v340_v3, %v358_v6  ;;  %v5711_v18 = vsub.f32 %v341_v4, %v361_v8  ;;  %v5713_v19 = vpack.c.bf16 %v364_v11, %v361_v8  ;;  %v5715_v20 = vsub.f32 %v342_v7, %v364_v11  ;;  %v847_v6 = vld [vmem:[#allocation7 + $0x28] sm:$0xff]  ;;  %s5133_s29 = smul.u32 896, %s5509_s28  ;;  %s4026_s16 = scalar_lea.sflag [#allocation4], %s5678_s15 }
  0x8d   : > { %v5717_v21 = vand.u32 4294901760, %v352_v12  ;;  %4598 = vmatpush3.bf16.msra.mxu0 %v5705_v15  ;;  %v436_v22 = vand.u32 4294901760, %v5707_v16  ;;  %v865_v25 = vand.u32 4294901760, %v5702_v13  ;;  %v5732_v28 = vsub.f32 %v5700_v10, %v862_v14  ;;  %s6759_s12 = scalar_lea.vmem [#allocation10], %s5132_s23  ;;  %s5447_s30 = smov [#allocation10]  }
  0x8e   : > { %v443_v23 = vand.u32 4294901760, %v5709_v17  ;;  %v450_v24 = vand.u32 4294901760, %v5711_v18  ;;  %4599 = vmatprep.subr.bf16.mxu0 %v6829_v0  ;;  %v457_v27 = vand.u32 4294901760, %v5715_v20  ;;  %v868_v43 = vand.u32 4294901760, %v5743_v32  ;;  %s4040_s11 = sshll.u32 %s6759_s12, 4  ;;  %s6771_s21 = scalar_lea.hbm %s6824_s7, %s5133_s29  ;;  %s6773_s11 = int_to_ptr.vmem [resolvable:$true] %s4040_s11 }
  0x8f   : > { %v5726_v26 = vsub.f32 %v352_v12, %v5717_v21  ;;  %v437_v29 = vsub.f32 %v5707_v16, %v436_v22  ;;  %v947_v35 = vand.u32 4294901760, %v5732_v28  ;;  %v5756_v39 = vsub.f32 %v5702_v13, %v865_v25  ;;  %v848_v12 = vld [vmem:[#allocation7 + $0x30] sm:$0xff]  ;;  %s5360_s28 = scalar_lea.vmem %s6773_s11, 896  ;;  %s5364_s9 = sshll.u32 %s5447_s30, 4  ;;  %s5365_s9 = int_to_ptr.vmem [resolvable:$false] %s5364_s9 }
  0x90   : > { %v444_v30 = vsub.f32 %v5709_v17, %v443_v23  ;;  %v451_v31 = vsub.f32 %v5711_v18, %v450_v24  ;;  %v458_v34 = vsub.f32 %v5715_v20, %v457_v27  ;;  %v871_v47 = vand.u32 4294901760, %v5750_v36  ;;  %p5361_p10 = scmp.ne.s32.totalorder %s6773_s11, %s5360_s28  ;;  %s5366_s10 = scalar_lea.vmem %s5365_s9, 1792 }
  0x91   : > { %v425_v33 = vand.u32 4294901760, %v5726_v26  ;;  %4601 = vmatpush3.bf16.msra.mxu0 %v5713_v19  ;;  %v438_v37 = vand.u32 4294901760, %v437_v29  ;;  %v948_v42 = vsub.f32 %v5732_v28, %v947_v35  ;;  %v954_v46 = vand.u32 4294901760, %v5756_v39  ;;  %p5367_p12 = scmp.lt.s32.totalorder %s6773_s11, %s5365_s9  ;;  %p5368_p2 = scmp.lt.s32.totalorder %s5366_s10, %s5360_s28 }
  0x92   : > { %v445_v38 = vand.u32 4294901760, %v444_v30  ;;  %4602 = vmatprep.subr.bf16.mxu0 %v6829_v0  ;;  %v452_v41 = vand.u32 4294901760, %v451_v31  ;;  %v459_v45 = vand.u32 4294901760, %v458_v34  ;;  %v5769_v49 = vsub.f32 %v5743_v32, %v868_v43  ;;  %p5362_p3 = pnand %p5361_p10, %p5633_p5 }
  0x93   : > { %v426_v40 = vsub.f32 %v5726_v26, %v425_v33  ;;  %v949_v50 = vand.u32 4294901760, %v948_v42  ;;  %v955_v51 = vsub.f32 %v5756_v39, %v954_v46  ;;  %v5777_v52 = vsub.f32 %v5750_v36, %v871_v47  ;;  %v4152_v42 = vld [vmem:[%s6819_s2] ss:$0 sm:$0xff]  ;;  %p5369_p1 = por %p5368_p2, %p5367_p12 }
  0x94   : > { %v4603_v44 = vpack.c.bf16 %v445_v38, %v438_v37  ;;  %v961_v53 = vand.u32 4294901760, %v5769_v49  ;;  %v4606_v54 = vpack.c.bf16 %v459_v45, %v452_v41  ;;  %v4609_v61 = vpack.c.bf16 %v5709_v17, %v5707_v16  ;;  %p5363_p7 = pneg %p5362_p3 }
  0x95   : > { %v427_v48 = vand.u32 4294901760, %v426_v40  ;;  %v956_v55 = vand.u32 4294901760, %v955_v51  ;;  %v968_v56 = vand.u32 4294901760, %v5777_v52  ;;  %v4612_v2 = vpack.c.bf16 %v5715_v20, %v5711_v18 }
  0x96   : > { %v962_v57 = vsub.f32 %v5769_v49, %v961_v53  ;;  %v4621_v3 = vpack.c.bf16 %v443_v23, %v436_v22  ;;  %v4624_v4 = vpack.c.bf16 %v457_v27, %v450_v24  ;;  %v874_v7 = vand.u32 4294901760, %v846_v5  ;;  %p5370_p4 = pnand %p5369_p1, %p5363_p7 }
  0x97   : > { %4311 = vmatmul.mubr.f32.vlgmr.msra.gmra.mrb[0].mxu0 %v427_v48  ;;  %v4645_v58 = vpack.c.bf16 %v956_v55, %v949_v50  ;;  %v969_v59 = vsub.f32 %v5777_v52, %v968_v56  ;;  %v877_v8 = vand.u32 4294901760, %v847_v6  ;;  %v880_v18 = vand.u32 4294901760, %v848_v12 }
  0x98   : > { %4604 = vmatpush3.bf16.msra.mxu0 %v4603_v44  ;;  %4321 = vmatprep.mubr.msk.f32.mxu0 %vm5445_vm0, %v6831_v1  ;;  %v963_v60 = vand.u32 4294901760, %v962_v57  ;;  %v5831_v9 = vsub.f32 %v846_v5, %v874_v7  ;;  %v5843_v34 = vpack.c.bf16 %v865_v25, %v862_v14  ;;  %v5852_v41 = vpack.c.bf16 %v871_v47, %v868_v43  ;;  %v1403_v5 = vld [vmem:[#allocation8 + $0x10] sm:$0xff] }
  0x99   : > { %4605 = vmatprep.subr.bf16.mxu0 %v6829_v0  ;;  %4646 = vmatpush3.bf16.msra.mxu1 %v4645_v58  ;;  %v970_v62 = vand.u32 4294901760, %v969_v59  ;;  %v5833_v11 = vsub.f32 %v847_v6, %v877_v8  ;;  %v988_v22 = vsub.f32 %v848_v12, %v880_v18  ;;  %v5857_v10 = vpack.c.bf16 %v877_v8, %v874_v7  ;;  %v1410_v6 = vld [vmem:[#allocation8 + $0x48] sm:$0xff] }
  0x9a   : > { %4647 = vmatprep.subr.bf16.mxu1 %v6829_v0  ;;  %v975_v16 = vand.u32 4294901760, %v5831_v9  ;;  %v4657_v51 = vpack.c.bf16 %v5756_v39, %v5732_v28  ;;  %v4660_v57 = vpack.c.bf16 %v5777_v52, %v5769_v49  ;;  %v1402_v28 = vld [vmem:[#allocation8 + $0x8] sm:$0xff]  ;;  %v1404_v39 = vld [vmem:[#allocation8 + $0x18] sm:$0xff]  ;;  %v1411_v52 = vld [vmem:[#allocation8 + $0x50] sm:$0xff]  ;;  %v2146_v8 = vand.u32 4294901760, %v1403_v5 }
  0x9b   : > { %v4648_v63 = vpack.c.bf16 %v970_v62, %v963_v60  ;;  %v982_v17 = vand.u32 4294901760, %v5833_v11  ;;  %v989_v27 = vand.u32 4294901760, %v988_v22  ;;  %v4663_v14 = vpack.c.bf16 %v5833_v11, %v5831_v9 }
  0x9c   : > { %4607 = vmatpush3.bf16.msra.mxu0 %v4606_v54  ;;  %v976_v20 = vsub.f32 %v5831_v9, %v975_v16  ;;  %v4684_v62 = vpack.c.bf16 %v968_v56, %v961_v53  ;;  %v2144_v53 = vand.u32 4294901760, %v1404_v39  ;;  %v1401_v56 = vld [vmem:[#allocation8] sm:$0xff]  ;;  %v2150_v9 = vand.u32 4294901760, %v1410_v6 }
  0x9d   : > { %4608 = vmatprep.subr.bf16.mxu0 %v6829_v0  ;;  %4649 = vmatpush3.bf16.msra.mxu1 %v4648_v63  ;;  %v990_v31 = vsub.f32 %v988_v22, %v989_v27  ;;  %v4687_v32 = vpack.c.bf16 %v982_v17, %v975_v16  ;;  %v1408_v63 = vld [vmem:[#allocation8 + $0x38] sm:$0xff]  ;;  %v1423_v16 = vld [vmem:[#allocation8 + $0xb0] sm:$0xff]  ;;  %vm4023_vm5 = vcmask 130048  }
  0x9e   : > { %4650 = vmatprep.subr.bf16.mxu1 %v6829_v0  ;;  %v977_v24 = vand.u32 4294901760, %v976_v20  ;;  %v1509_v20 = vand.u32 4294901760, %v1423_v16 }
  0x9f   : > { %4322 = vmatmul.mubr.f32.vlgmr.msra.gmra.mrb[0].mxu0 %v5717_v21  ;;  %v991_v37 = vand.u32 4294901760, %v990_v31  ;;  %v1424_v31 = vld [vmem:[#allocation8 + $0xb8] sm:$0xff] }
  0xa0   : > { %4610 = vmatpush3.bf16.msra.mxu0 %v4609_v61  ;;  %4332 = vmatprep.mubr.msk.f32.mxu0 %vm5445_vm0, %v6831_v1  ;;  %v4681_v61 = vpack.c.bf16 %v954_v46, %v947_v35  ;;  %v1409_v35 = vld [vmem:[#allocation8 + $0x40] sm:$0xff]  ;;  %v1497_v46 = vand.u32 4294901760, %v1402_v28 }
  0xa1   : > { %4611 = vmatprep.subr.bf16.mxu0 %v6829_v0  ;;  %v1501_v49 = vand.u32 4294901760, %v1409_v35 }
  0xa3   : > { %v5915_v7 = vpack.c.bf16 %v1501_v49, %v1497_v46 }
  0xa4   : > { %4613 = vmatpush3.bf16.msra.mxu0 %v4612_v2  ;;  %v2148_v2 = vand.u32 4294901760, %v1411_v52 }
  0xa5   : > { %4614 = vmatprep.subr.bf16.mxu0 %v6829_v0  ;;  %6927 = vst [vmem:[#allocation16_spill] sm:$0xff] %v5915_v7 }
  0xa7   : > { %4333 = vmatmul.mubr.f32.vlgmr.msra.gmra.mrb[0].mxu0 %v5726_v26 }
  0xa8   : > { %4616 = vmatpush3.bf16.msra.mxu0 %v5705_v15  ;;  %4343 = vmatprep.mubr.msk.f32.mxu0 %vm5445_vm0, %v6831_v1 }
  0xa9   : > { %4617 = vmatprep.subr.bf16.mxu0 %v6829_v0 }
  0xac   : > { %4619 = vmatpush3.bf16.msra.mxu0 %v5713_v19 }
  0xad   : > { %4620 = vmatprep.subr.bf16.mxu0 %v6829_v0 }
  0xaf   : > { %4344 = vmatmul.mubr.f32.vlgmr.msra.gmra.mrb[0].mxu0 %v425_v33 }
  0xb0   : > { %4622 = vmatpush3.bf16.msra.mxu0 %v4621_v3  ;;  %4354 = vmatprep.mubr.msk.f32.mxu0 %vm5445_vm0, %v6831_v1  ;;  %v1499_v3 = vand.u32 4294901760, %v1401_v56 }
  0xb1   : > { %4623 = vmatprep.subr.bf16.mxu0 %v6829_v0 }
  0xb4   : > { %4625 = vmatpush3.bf16.msra.mxu0 %v4624_v4  ;;  %v1503_v4 = vand.u32 4294901760, %v1408_v63 }
  0xb5   : > { %4626 = vmatprep.subr.bf16.mxu0 %v6829_v0 }
  0xb6   : > { %v5919_v12 = vpack.c.bf16 %v1503_v4, %v1499_v3 }
  0xb7   : > { %4355 = vmatmul.mubr.f32.vlgmr.msra.gmra.mrb[0].mxu0 %v5717_v21 }
  0xb8   : > { %4628 = vmatpush3.bf16.msra.mxu0 %v5705_v15  ;;  %4365 = vmatprep.mubr.msk.f32.mxu0 %vm5445_vm0, %v6831_v1  ;;  %v849_v15 = vld [vmem:[#allocation7 + $0x38] sm:$0xff]  ;;  %6929 = vst [vmem:[#allocation18_spill] sm:$0xff] %v5919_v12 }
  0xb9   : > { %4629 = vmatprep.subr.bf16.mxu0 %v6829_v0 }
  0xbc   : > { %4631 = vmatpush3.bf16.msra.mxu0 %v5713_v19  ;;  %v883_v19 = vand.u32 4294901760, %v849_v15 }
  0xbd   : > { %4632 = vmatprep.subr.bf16.mxu0 %v6829_v0 }
  0xbe   : > { %v995_v23 = vsub.f32 %v849_v15, %v883_v19  ;;  %v5861_v13 = vpack.c.bf16 %v883_v19, %v880_v18  ;;  %v1416_v15 = vld [vmem:[#allocation8 + $0x78] sm:$0xff]  ;;  %v5922_v18 = vpack.c.bf16 %v2150_v9, %v2146_v8 }
  0xbf   : > { %4366 = vmatmul.mubr.f32.vlgmr.msra.gmra.mrb[0].mxu0 %v5717_v21  ;;  %v983_v21 = vsub.f32 %v5833_v11, %v982_v17  ;;  %v5917_v11 = vpack.c.bf16 %v2148_v2, %v2144_v53  ;;  %v1418_v17 = vld [vmem:[#allocation8 + $0x88] sm:$0xff]  ;;  %v1505_v19 = vand.u32 4294901760, %v1416_v15 }
  0xc0   : > { %4384 = vmatprep.mubr.msk.f32.mxu0 %vm5445_vm0, %v6831_v1  ;;  %v996_v29 = vand.u32 4294901760, %v995_v23  ;;  %4634 = vmatpush3.bf16.msra.mxu0 %v5843_v34  ;;  %v4666_v25 = vpack.c.bf16 %v995_v23, %v988_v22  ;;  %6930 = vst [vmem:[#allocation19_spill] sm:$0xff] %v5922_v18  ;;  %v2152_v22 = vand.u32 4294901760, %v1418_v17 }
  0xc1   : > { %v984_v26 = vand.u32 4294901760, %v983_v21  ;;  %4635 = vmatprep.subr.bf16.mxu0 %v6829_v0  ;;  %6928 = vst [vmem:[#allocation17_spill] sm:$0xff] %v5917_v11  ;;  %v1425_v21 = vld [vmem:[#allocation8 + $0xc0] sm:$0xff] }
  0xc2   : > { %v997_v33 = vsub.f32 %v995_v23, %v996_v29  ;;  %v4690_v36 = vpack.c.bf16 %v996_v29, %v989_v27  ;;  %v1415_v23 = vld [vmem:[#allocation8 + $0x70] sm:$0xff] }
  0xc3   : > { %v4651_v30 = vpack.c.bf16 %v984_v26, %v977_v24  ;;  %v1422_v24 = vld [vmem:[#allocation8 + $0xa8] sm:$0xff]  ;;  %v2156_v26 = vand.u32 4294901760, %v1425_v21  ;;  %v1507_v27 = vand.u32 4294901760, %v1415_v23 }
  0xc4   : > { %v998_v38 = vand.u32 4294901760, %v997_v33  ;;  %4637 = vmatpush3.bf16.msra.mxu0 %v5852_v41  ;;  %v1511_v29 = vand.u32 4294901760, %v1422_v24  ;;  %v5927_v33 = vpack.c.bf16 %v1509_v20, %v1505_v19 }
  0xc5   : > { %4652 = vmatpush3.bf16.msra.mxu1 %v4651_v30  ;;  %4638 = vmatprep.subr.bf16.mxu0 %v6829_v0  ;;  %v1417_v30 = vld [vmem:[#allocation8 + $0x80] sm:$0xff] }
  0xc6   : > { %4653 = vmatprep.subr.bf16.mxu1 %v6829_v0  ;;  %v4654_v40 = vpack.c.bf16 %v998_v38, %v991_v37  ;;  %6931 = vst [vmem:[#allocation20_spill] sm:$0xff] %v5927_v33  ;;  %v2158_v37 = vand.u32 4294901760, %v1424_v31  ;;  %v5929_v38 = vpack.c.bf16 %v2156_v26, %v2152_v22 }
  0xc8   : > { %4640 = vmatpush3.bf16.msra.mxu0 %v5857_v10  ;;  %6932 = vst [vmem:[#allocation21_spill] sm:$0xff] %v5929_v38 }
  0xc9   : > { %4655 = vmatpush3.bf16.msra.mxu1 %v4654_v40  ;;  %4641 = vmatprep.subr.bf16.mxu0 %v6829_v0  ;;  %v5931_v40 = vpack.c.bf16 %v1511_v29, %v1507_v27 }
  0xca   : > { %4656 = vmatprep.subr.bf16.mxu1 %v6829_v0 }
  0xcb   : > { %6933 = vst [vmem:[#allocation22_spill] sm:$0xff] %v5931_v40 }
  0xcc   : > { %4643 = vmatpush3.bf16.msra.mxu0 %v5861_v13 }
  0xcd   : > { %4705 = vmatprep.subr.bf16.mxu0 %v5915_v7 }
 0x192   : > { %v835_v43 = vpop.f32.mrb[0].mxu0 }
 0x193   : > { %v5064_v44 = vadd.f32 %v4152_v42, %v835_v43  ;;  %v4367_v45 = vpop.f32.mrb[1].mxu0  ;;  %v1429_v43 = vld [vmem:[#allocation8 + $0xe0] sm:$0xff] }
 0x195   : > { %vm839_vm2 = vcmp.ge.f32.partialorder %v5064_v44, 0.0  ;;  %v840_v47 = vmul.f32 0.2, %v5064_v44 }
 0x197   : > { %v841_v48 = vsel %vm839_vm2, %v5064_v44, %v840_v47  ;;  %v1436_v44 = vld [vmem:[#allocation8 + $0x118] sm:$0xff]  ;;  %v1515_v47 = vand.u32 4294901760, %v1429_v43 }
 0x198   : > { %v859_v50 = vsel %vm857_vm3, %v841_v48, 0  ;;  %v1519_v48 = vand.u32 4294901760, %v1436_v44 }
 0x199   : > { %v934_v54 = vand.u32 4294901760, %v859_v50 }
 0x19b   : > { %v935_v55 = vsub.f32 %v859_v50, %v934_v54  ;;  %4404 = vmatmul.mubr.f32.vlgmr.msra.gmra.mrb[0].mxu1 %v934_v54  ;;  %v1431_v50 = vld [vmem:[#allocation8 + $0xf0] sm:$0xff] }
 0x19c   : > { %4658 = vmatpush3.bf16.msra.mxu1 %v4657_v51  ;;  %4422 = vmatprep.mubr.msk.f32.mxu1 %vm5445_vm0, %v6831_v1  ;;  %v5938_v51 = vsub.f32 %v1402_v28, %v1497_v46  ;;  %v5961_v46 = vsub.f32 %v1416_v15, %v1505_v19 }
 0x19d   : > { %4659 = vmatprep.subr.bf16.mxu1 %v6829_v0  ;;  %v936_v58 = vand.u32 4294901760, %v935_v55 }
 0x19f   : > { %v937_v59 = vsub.f32 %v935_v55, %v936_v58 }
 0x1a0   : > { %4661 = vmatpush3.bf16.msra.mxu1 %v4660_v57  ;;  %v5944_v57 = vsub.f32 %v1411_v52, %v2148_v2  ;;  %v5965_v52 = vsub.f32 %v1418_v17, %v2152_v22  ;;  %v5969_v2 = vsub.f32 %v1415_v23, %v1507_v27  ;;  %v5988_v22 = vsub.f32 %v1429_v43, %v1515_v47 }
 0x1a1   : > { %4662 = vmatprep.subr.bf16.mxu1 %v6829_v0  ;;  %v938_v60 = vand.u32 4294901760, %v937_v59  ;;  %v5949_v59 = vsub.f32 %v1408_v63, %v1503_v4  ;;  %v1444_v63 = vld [vmem:[#allocation8 + $0x158] sm:$0xff]  ;;  %v5990_v23 = vsub.f32 %v1436_v44, %v1519_v48 }
 0x1a2   : > { %v1521_v27 = vand.u32 4294901760, %v1444_v63 }
 0x1a3   : > { %4385 = vmatmul.mubr.f32.vlgmr.msra.gmra.mrb[2].mxu0 %v938_v60  ;;  %v5951_v60 = vsub.f32 %v1403_v5, %v2146_v8  ;;  %v5975_v5 = vsub.f32 %v1424_v31, %v2158_v37  ;;  %v1446_v8 = vld [vmem:[#allocation8 + $0x168] sm:$0xff]  ;;  %v6953_v7 = vand.u32 4294901760, %v5949_v59 }
 0x1a4   : > { %4664 = vmatpush3.bf16.msra.mxu1 %v4663_v14  ;;  %1577 = vmatprep.mubr.f32.mxu0 %v6831_v1 }
 0x1a5   : > { %4665 = vmatprep.subr.bf16.mxu1 %v6829_v0  ;;  %4707 = vmatpush1.bf16.msra.mxu0 %v5919_v12 }
 0x1a6   : > { %4709 = vmatprep.subr.bf16.mxu0 %v5927_v33 }
 0x1a8   : > { %4667 = vmatpush3.bf16.msra.mxu1 %v4666_v25 }
 0x1a9   : > { %4668 = vmatprep.subr.bf16.mxu1 %v6829_v0  ;;  %4711 = vmatpush1.bf16.msra.mxu0 %v5931_v40 }
 0x1ab   : > { %4423 = vmatmul.mubr.f32.vlgmr.msra.gmra.mrb[0].mxu1 %v935_v55  ;;  %v5942_v55 = vsub.f32 %v1404_v39, %v2144_v53  ;;  %v2162_v39 = vand.u32 4294901760, %v1431_v50  ;;  %v5967_v53 = vsub.f32 %v1425_v21, %v2156_v26  ;;  %v1450_v21 = vld [vmem:[#allocation8 + $0x188] sm:$0xff] }
 0x1ac   : > { %4670 = vmatpush3.bf16.msra.mxu1 %v5843_v34  ;;  %4441 = vmatprep.mubr.msk.f32.mxu1 %vm5445_vm0, %v6831_v1 }
 0x1ad   : > { %4671 = vmatprep.subr.bf16.mxu1 %v6829_v0  ;;  %v5992_v26 = vsub.f32 %v1431_v50, %v2162_v39 }
 0x1b0   : > { %4673 = vmatpush3.bf16.msra.mxu1 %v5852_v41 }
 0x1b1   : > { %4674 = vmatprep.subr.bf16.mxu1 %v6829_v0 }
 0x1b4   : > { %4676 = vmatpush3.bf16.msra.mxu1 %v5857_v10 }
 0x1b5   : > { %4677 = vmatprep.subr.bf16.mxu1 %v6829_v0 }
 0x1b8   : > { %4679 = vmatpush3.bf16.msra.mxu1 %v5861_v13 }
 0x1b9   : > { %4680 = vmatprep.subr.bf16.mxu1 %v6829_v0 }
 0x1bb   : > { %4442 = vmatmul.mubr.f32.vlgmr.msra.gmra.mrb[0].mxu1 %v936_v58  ;;  %v5947_v58 = vsub.f32 %v1401_v56, %v1499_v3  ;;  %v1438_v56 = vld [vmem:[#allocation8 + $0x128] sm:$0xff]  ;;  %v5971_v3 = vsub.f32 %v1422_v24, %v1511_v29 }
 0x1bc   : > { %4682 = vmatpush3.bf16.msra.mxu1 %v4681_v61  ;;  %4460 = vmatprep.mubr.msk.f32.mxu1 %vm5445_vm0, %v6831_v1  ;;  %v5953_v61 = vsub.f32 %v1410_v6, %v2150_v9  ;;  %v1451_v6 = vld [vmem:[#allocation8 + $0x190] sm:$0xff]  ;;  %v1453_v9 = vld [vmem:[#allocation8 + $0x1a0] sm:$0xff]  ;;  %v2166_v24 = vand.u32 4294901760, %v1438_v56 }
 0x1bd   : > { %4683 = vmatprep.subr.bf16.mxu1 %v6829_v0  ;;  %v1525_v29 = vand.u32 4294901760, %v1451_v6  ;;  %v2172_v31 = vand.u32 4294901760, %v1453_v9 }
 0x1c0   : > { %4685 = vmatpush3.bf16.msra.mxu1 %v4684_v62 }
 0x1c1   : > { %4686 = vmatprep.subr.bf16.mxu1 %v6829_v0 }
 0x1c4   : > { %4688 = vmatpush3.bf16.msra.mxu1 %v4687_v32 }
 0x1c5   : > { %4689 = vmatprep.subr.bf16.mxu1 %v6829_v0 }
 0x1c8   : > { %4691 = vmatpush3.bf16.msra.mxu1 %v4690_v36  ;;  %v1439_v36 = vld [vmem:[#allocation8 + $0x130] sm:$0xff] }
 0x1c9   : > { %4692 = vmatprep.subr.bf16.mxu1 %v6829_v0  ;;  %v2164_v45 = vand.u32 4294901760, %v1439_v36 }
 0x1cb   : > { %4461 = vmatmul.mubr.f32.vlgmr.msra.gmra.mrb[0].mxu1 %v934_v54  ;;  %v5985_v19 = vsub.f32 %v1439_v36, %v2164_v45  ;;  %v6000_v36 = vsub.f32 %v1444_v63, %v1521_v27  ;;  %v6837_v63 = vand.u32 4294901760, %v5938_v51 }
 0x1cc   : > { %4694 = vmatpush3.bf16.msra.mxu1 %v5843_v34  ;;  %4479 = vmatprep.mubr.msk.f32.mxu1 %vm5445_vm0, %v6831_v1  ;;  %v2154_v34 = vand.u32 4294901760, %v1417_v30 }
 0x1cd   : > { %4695 = vmatprep.subr.bf16.mxu1 %v6829_v0 }
 0x1ce   : > { %v5934_v14 = vpack.c.bf16 %v2158_v37, %v2154_v34  ;;  %v5973_v4 = vsub.f32 %v1417_v30, %v2154_v34  ;;  %v2168_v30 = vand.u32 4294901760, %v1446_v8  ;;  %v5994_v34 = vpack.c.bf16 %v2166_v24, %v2162_v39 }
 0x1cf   : > { %v5996_v37 = vsub.f32 %v1438_v56, %v2166_v24 }
 0x1d0   : > { %4697 = vmatpush3.bf16.msra.mxu1 %v5852_v41  ;;  %v1430_v41 = vld [vmem:[#allocation8 + $0xe8] sm:$0xff]  ;;  %6934 = vst [vmem:[#allocation23_spill] sm:$0xff] %v5934_v14  ;;  %6938 = vst [vmem:[#allocation27_spill] sm:$0xff] %v5994_v34  ;;  %v6004_v43 = vpack.c.bf16 %v2172_v31, %v2168_v30  ;;  %v6007_v44 = vsub.f32 %v1446_v8, %v2168_v30  ;;  %v6833_v8 = vand.u32 4294901760, %v5942_v55 }
 0x1d1   : > { %4698 = vmatprep.subr.bf16.mxu1 %v6829_v0  ;;  %v1513_v25 = vand.u32 4294901760, %v1430_v41 }
 0x1d2   : > { %6940 = vst [vmem:[#allocation29_spill] sm:$0xff] %v6004_v43 }
 0x1d3   : > { %v5978_v15 = vsub.f32 %v1430_v41, %v1513_v25 }
 0x1d4   : > { %4700 = vmatpush3.bf16.msra.mxu1 %v5857_v10  ;;  %v1437_v10 = vld [vmem:[#allocation8 + $0x120] sm:$0xff] }
 0x1d5   : > { %4701 = vmatprep.subr.bf16.mxu1 %v6829_v0  ;;  %v1517_v32 = vand.u32 4294901760, %v1437_v10 }
 0x1d7   : > { %v5955_v62 = vpack.c.bf16 %v1517_v32, %v1513_v25  ;;  %v1452_v25 = vld [vmem:[#allocation8 + $0x198] sm:$0xff] }
 0x1d8   : > { %4703 = vmatpush3.bf16.msra.mxu1 %v5861_v13  ;;  %v1432_v13 = vld [vmem:[#allocation8 + $0xf8] sm:$0xff]  ;;  %v2174_v56 = vand.u32 4294901760, %v1452_v25 }
 0x1d9   : > { %4801 = vmatprep.subr.bf16.mxu1 %v5917_v11  ;;  %v2160_v42 = vand.u32 4294901760, %v1432_v13  ;;  %6935 = vst [vmem:[#allocation24_spill] sm:$0xff] %v5955_v62  ;;  %4713 = vmatprep.subr.bf16.mxu0 %v5955_v62 }
 0x1db   : > { %4480 = vmatmul.mubr.f32.vlgmr.msra.gmra.mrb[0].mxu1 %v934_v54  ;;  %v5940_v54 = vsub.f32 %v1409_v35, %v1501_v49  ;;  %v5957_v28 = vpack.c.bf16 %v2164_v45, %v2160_v42  ;;  %v5959_v35 = vpack.c.bf16 %v1519_v48, %v1515_v47  ;;  %v5963_v49 = vsub.f32 %v1423_v16, %v1509_v20  ;;  %v1443_v20 = vld [vmem:[#allocation8 + $0x150] sm:$0xff] }
 0x1dc   : > { %2224 = vmatprep.mubr.f32.mxu1 %v6831_v1  ;;  %4803 = vmatpush1.bf16.msra.mxu1 %v5922_v18  ;;  %v5980_v16 = vsub.f32 %v1437_v10, %v1517_v32  ;;  %v5983_v17 = vsub.f32 %v1432_v13, %v2160_v42  ;;  %v1523_v41 = vand.u32 4294901760, %v1443_v20  ;;  %v1527_v10 = vand.u32 4294901760, %v1450_v21  ;;  %v1445_v13 = vld [vmem:[#allocation8 + $0x160] sm:$0xff] }
 0x1dd   : > { %4805 = vmatprep.subr.bf16.mxu1 %v5929_v38  ;;  %6936 = vst [vmem:[#allocation25_spill] sm:$0xff] %v5957_v28  ;;  %6937 = vst [vmem:[#allocation26_spill] sm:$0xff] %v5959_v35  ;;  %4715 = vmatpush1.bf16.msra.mxu0 %v5959_v35  ;;  %v5998_v32 = vpack.c.bf16 %v1525_v29, %v1521_v27  ;;  %v6002_v42 = vsub.f32 %v1451_v6, %v1525_v29  ;;  %v2170_v39 = vand.u32 4294901760, %v1445_v13 }
 0x1de   : > { %v6009_v45 = vsub.f32 %v1453_v9, %v2172_v31  ;;  %v6011_v47 = vpack.c.bf16 %v1527_v10, %v1523_v41  ;;  %v6013_v48 = vsub.f32 %v1443_v20, %v1523_v41  ;;  %v6017_v50 = vsub.f32 %v1450_v21, %v1527_v10 }
 0x1df   : > { %6939 = vst [vmem:[#allocation28_spill] sm:$0xff] %v5998_v32  ;;  %4717 = vmatprep.subr.bf16.mxu0 %v5998_v32  ;;  %v6834_v6 = vand.u32 4294901760, %v5940_v54  ;;  %v6835_v9 = vand.u32 4294901760, %v5944_v57  ;;  %v6836_v20 = vand.u32 4294901760, %v5947_v58  ;;  %v6025_v24 = vpack.c.bf16 %v2174_v56, %v2170_v39 }
 0x1e0   : > { %4807 = vmatpush1.bf16.msra.mxu1 %v5934_v14  ;;  %6941 = vst [vmem:[#allocation30_spill] sm:$0xff] %v6011_v47  ;;  %v6027_v27 = vsub.f32 %v1445_v13, %v2170_v39  ;;  %v6029_v21 = vsub.f32 %v1452_v25, %v2174_v56  ;;  %v1592_v29 = vsub.f32 %v5938_v51, %v6837_v63  ;;  %v6844_v25 = vand.u32 4294901760, %v5949_v59 }
 0x1e1   : > { %4809 = vmatprep.subr.bf16.mxu1 %v5957_v28  ;;  %4719 = vmatpush1.bf16.msra.mxu0 %v6011_v47  ;;  %6942 = vst [vmem:[#allocation31_spill] sm:$0xff] %v6025_v24  ;;  %v1604_v30 = vsub.f32 %v5940_v54, %v6834_v6  ;;  %v2239_v31 = vsub.f32 %v5942_v55, %v6833_v8  ;;  %v6852_v39 = vand.u32 4294901760, %v5951_v60  ;;  %v6845_v56 = vand.u32 4294901760, %v5953_v61 }
 0x1e2   : > { %6943 = vst [vmem:[#allocation32_spill] sm:$0xff] %v6027_v27  ;;  %6944 = vst [vmem:[#allocation33_spill] sm:$0xff] %v6029_v21  ;;  %v2251_v41 = vsub.f32 %v5944_v57, %v6835_v9  ;;  %v1598_v10 = vsub.f32 %v5947_v58, %v6836_v20  ;;  %v1593_v13 = vand.u32 4294901760, %v1592_v29  ;;  %v1610_v9 = vsub.f32 %v5949_v59, %v6844_v25 }
 0x1e3   : > { %v1605_v0 = vand.u32 4294901760, %v1604_v30  ;;  %v2240_v1 = vand.u32 4294901760, %v2239_v31  ;;  %v2245_v20 = vsub.f32 %v5951_v60, %v6852_v39  ;;  %v2257_v29 = vsub.f32 %v5953_v61, %v6845_v56 }
 0x1e4   : > { %4811 = vmatpush1.bf16.msra.mxu1 %v5994_v34  ;;  %v2252_v8 = vand.u32 4294901760, %v2251_v41  ;;  %v1599_v6 = vand.u32 4294901760, %v1598_v10  ;;  %v6849_v63 = vand.u32 4294901760, %v5961_v46  ;;  %v6846_v30 = vand.u32 4294901760, %v5963_v49 }
 0x1e5   : > { %4813 = vmatprep.subr.bf16.mxu1 %v6004_v43  ;;  %v6847_v31 = vand.u32 4294901760, %v5965_v52  ;;  %v1611_v41 = vand.u32 4294901760, %v1610_v9  ;;  %v2246_v10 = vand.u32 4294901760, %v2245_v20  ;;  %v2258_v43 = vand.u32 4294901760, %v2257_v29 }
 0x1e6   : > { %v4816_v47 = vpack.c.bf16 %v2252_v8, %v2240_v1  ;;  %v1616_v25 = vsub.f32 %v5961_v46, %v6849_v63  ;;  %v1628_v56 = vsub.f32 %v5963_v49, %v6846_v30  ;;  %v6848_v1 = vand.u32 4294901760, %v5967_v53 }
 0x1e7   : > { %v6850_v8 = vand.u32 4294901760, %v5969_v2  ;;  %v6073_v9 = vpack.c.bf16 %v1611_v41, %v1599_v6  ;;  %v6075_v20 = vpack.c.bf16 %v2258_v43, %v2246_v10  ;;  %v6855_v43 = vand.u32 4294901760, %v5973_v4 }
 0x1e8   : > { %4815 = vmatpush1.bf16.msra.mxu1 %v6025_v24  ;;  %v4720_v24 = vpack.c.bf16 %v1605_v0, %v1593_v13  ;;  %v2263_v0 = vsub.f32 %v5965_v52, %v6847_v31  ;;  %v1617_v13 = vand.u32 4294901760, %v1616_v25  ;;  %v2275_v30 = vsub.f32 %v5967_v53, %v6848_v1 }
 0x1e9   : > { %4817 = vmatprep.subr.bf16.mxu1 %v4816_v47  ;;  %v1629_v47 = vand.u32 4294901760, %v1628_v56  ;;  %v1622_v31 = vsub.f32 %v5969_v2, %v6850_v8  ;;  %v6858_v25 = vand.u32 4294901760, %v5975_v5  ;;  %v6859_v41 = vand.u32 4294901760, %v5978_v15 }
 0x1ea   : > { %4721 = vmatprep.subr.bf16.mxu0 %v4720_v24  ;;  %v6851_v24 = vand.u32 4294901760, %v5971_v3  ;;  %v2264_v29 = vand.u32 4294901760, %v2263_v0  ;;  %v2276_v10 = vand.u32 4294901760, %v2275_v30  ;;  %v6860_v1 = vand.u32 4294901760, %v5980_v16 }
 0x1eb   : > { %v6090_v56 = vpack.c.bf16 %v1629_v47, %v1617_v13  ;;  %v1623_v0 = vand.u32 4294901760, %v1622_v31  ;;  %v2269_v8 = vsub.f32 %v5973_v4, %v6855_v43  ;;  %v1640_v39 = vsub.f32 %v5978_v15, %v6859_v41 }
 0x1ec   : > { %v1634_v6 = vsub.f32 %v5971_v3, %v6851_v24  ;;  %v2281_v24 = vsub.f32 %v5975_v5, %v6858_v25  ;;  %v6102_v32 = vpack.c.bf16 %v2276_v10, %v2264_v29  ;;  %v1652_v30 = vsub.f32 %v5980_v16, %v6860_v1 }
 0x1ed   : > { %v6865_v31 = vand.u32 4294901760, %v5983_v17  ;;  %v6863_v13 = vand.u32 4294901760, %v5985_v19  ;;  %v1641_v34 = vand.u32 4294901760, %v1640_v39  ;;  %v6864_v10 = vand.u32 4294901760, %v5988_v22 }
 0x1ee   : > { %v1635_v63 = vand.u32 4294901760, %v1634_v6  ;;  %v2270_v6 = vand.u32 4294901760, %v2269_v8  ;;  %v2282_v43 = vand.u32 4294901760, %v2281_v24  ;;  %v1653_v25 = vand.u32 4294901760, %v1652_v30 }
 0x1ef   : > { %v2287_v41 = vsub.f32 %v5983_v17, %v6865_v31  ;;  %v2299_v29 = vsub.f32 %v5985_v19, %v6863_v13  ;;  %v6868_v35 = vand.u32 4294901760, %v5990_v23  ;;  %v6872_v8 = vand.u32 4294901760, %v5996_v37 }
 0x1f0   : > { %v6109_v47 = vpack.c.bf16 %v1635_v63, %v1623_v0  ;;  %v6118_v1 = vpack.c.bf16 %v2282_v43, %v2270_v6  ;;  %v6869_v63 = vand.u32 4294901760, %v5992_v26  ;;  %v6123_v39 = vpack.c.bf16 %v1653_v25, %v1641_v34 }
 0x1f1   : > { %v2288_v24 = vand.u32 4294901760, %v2287_v41  ;;  %v2300_v0 = vand.u32 4294901760, %v2299_v29  ;;  %v1646_v30 = vsub.f32 %v5988_v22, %v6864_v10  ;;  %v1658_v13 = vsub.f32 %v5990_v23, %v6868_v35 }
 0x1f2   : > { %v2293_v43 = vsub.f32 %v5992_v26, %v6869_v63  ;;  %v2305_v6 = vsub.f32 %v5996_v37, %v6872_v8  ;;  %v6879_v34 = vand.u32 4294901760, %v6000_v36  ;;  %v1675_v29 = vand.u32 4294901760, %v6002_v42 }
 0x1f3   : > { %v6138_v25 = vpack.c.bf16 %v2300_v0, %v2288_v24  ;;  %v1647_v41 = vand.u32 4294901760, %v1646_v30  ;;  %v2310_v10 = vand.u32 4294901760, %v6007_v44  ;;  %v1659_v31 = vand.u32 4294901760, %v1658_v13 }
 0x1f4   : > { %v2294_v28 = vand.u32 4294901760, %v2293_v43  ;;  %v2306_v35 = vand.u32 4294901760, %v2305_v6  ;;  %v1664_v63 = vsub.f32 %v6000_v36, %v6879_v34  ;;  %v1676_v62 = vsub.f32 %v6002_v42, %v1675_v29 }
 0x1f5   : > { %v2311_v8 = vsub.f32 %v6007_v44, %v2310_v10  ;;  %v2322_v14 = vand.u32 4294901760, %v6009_v45  ;;  %v1669_v24 = vand.u32 4294901760, %v6013_v48  ;;  %v6149_v0 = vpack.c.bf16 %v1659_v31, %v1647_v41 }
 0x1f6   : > { %v6151_v30 = vpack.c.bf16 %v2306_v35, %v2294_v28  ;;  %v1665_v40 = vand.u32 4294901760, %v1664_v63  ;;  %v1681_v13 = vand.u32 4294901760, %v6017_v50  ;;  %v1677_v43 = vand.u32 4294901760, %v1676_v62 }
 0x1f7   : > { %v2312_v6 = vand.u32 4294901760, %v2311_v8  ;;  %v2323_v38 = vsub.f32 %v6009_v45, %v2322_v14  ;;  %v1670_v34 = vsub.f32 %v6013_v48, %v1669_v24  ;;  %v2316_v18 = vand.u32 4294901760, %v6027_v27 }
 0x1f8   : > { %6945 = vst [vmem:[#allocation34_spill] sm:$0xff] %v6151_v30  ;;  %v1682_v33 = vsub.f32 %v6017_v50, %v1681_v13  ;;  %v2328_v12 = vand.u32 4294901760, %v6029_v21  ;;  %v6161_v28 = vpack.c.bf16 %v1677_v43, %v1665_v40  ;;  %v6956_v62 = vand.u32 4294901760, %v5953_v61 }
 0x1f9   : > { %v2324_v35 = vand.u32 4294901760, %v2323_v38  ;;  %v1671_v63 = vand.u32 4294901760, %v1670_v34  ;;  %v2317_v41 = vsub.f32 %v6027_v27, %v2316_v18  ;;  %v6947_v38 = vand.u32 4294901760, %v5940_v54 }
 0x1fa   : > { %v1683_v8 = vand.u32 4294901760, %v1682_v33  ;;  %v2329_v11 = vsub.f32 %v6029_v21, %v2328_v12 }
 0x1fb   : > { %v6169_v30 = vpack.c.bf16 %v2324_v35, %v2312_v6  ;;  %v2318_v33 = vand.u32 4294901760, %v2317_v41  ;;  %v6946_v35 = vand.u32 4294901760, %v5938_v51  ;;  %v6955_v6 = vand.u32 4294901760, %v5951_v60 }
 0x1fc   : > { %v4734_v34 = vpack.c.bf16 %v1683_v8, %v1671_v63  ;;  %v2330_v43 = vand.u32 4294901760, %v2329_v11  ;;  %v6950_v63 = vand.u32 4294901760, %v5944_v57  ;;  %v6952_v8 = vand.u32 4294901760, %v5947_v58 }
 0x1fd   : > { %v6219_v40 = vpack.c.bf16 %v6956_v62, %v6955_v6  ;;  %v6967_v62 = vand.u32 4294901760, %v5973_v4  ;;  %v6968_v6 = vand.u32 4294901760, %v5975_v5 }
 0x1fe   : > { %v4830_v31 = vpack.c.bf16 %v2330_v43, %v2318_v33  ;;  %v6201_v33 = vpack.c.bf16 %v6947_v38, %v6946_v35  ;;  %v6949_v43 = vand.u32 4294901760, %v5942_v55  ;;  %v6213_v41 = vpack.c.bf16 %v6953_v7, %v6952_v8 }
 0x1ff   : > { %6957 = vst [vmem:[#allocation38_spill] sm:$0xff] %v6219_v40  ;;  %v6958_v38 = vand.u32 4294901760, %v5961_v46  ;;  %v6959_v35 = vand.u32 4294901760, %v5963_v49  ;;  %v6964_v7 = vand.u32 4294901760, %v5969_v2  ;;  %v6965_v8 = vand.u32 4294901760, %v5971_v3 }
 0x200   : > { %6948 = vst [vmem:[#allocation35_spill] sm:$0xff] %v6201_v33  ;;  %v6207_v11 = vpack.c.bf16 %v6950_v63, %v6949_v43  ;;  %6954 = vst [vmem:[#allocation37_spill] sm:$0xff] %v6213_v41  ;;  %v6961_v63 = vand.u32 4294901760, %v5965_v52  ;;  %v6962_v43 = vand.u32 4294901760, %v5967_v53  ;;  %v6243_v40 = vpack.c.bf16 %v6968_v6, %v6967_v62 }
 0x201   : > { %v6225_v33 = vpack.c.bf16 %v6959_v35, %v6958_v38  ;;  %v6237_v41 = vpack.c.bf16 %v6965_v8, %v6964_v7  ;;  %v6970_v38 = vand.u32 4294901760, %v5978_v15  ;;  %v6971_v35 = vand.u32 4294901760, %v5980_v16 }
 0x202   : > { %6951 = vst [vmem:[#allocation36_spill] sm:$0xff] %v6207_v11  ;;  %v6231_v11 = vpack.c.bf16 %v6962_v43, %v6961_v63  ;;  %6969 = vst [vmem:[#allocation42_spill] sm:$0xff] %v6243_v40  ;;  %v6973_v63 = vand.u32 4294901760, %v5983_v17  ;;  %v6974_v43 = vand.u32 4294901760, %v5985_v19  ;;  %v6976_v7 = vand.u32 4294901760, %v5988_v22 }
 0x203   : > { %6960 = vst [vmem:[#allocation39_spill] sm:$0xff] %v6225_v33  ;;  %6966 = vst [vmem:[#allocation41_spill] sm:$0xff] %v6237_v41  ;;  %v6249_v33 = vpack.c.bf16 %v6971_v35, %v6970_v38  ;;  %v6977_v8 = vand.u32 4294901760, %v5990_v23  ;;  %v6979_v6 = vand.u32 4294901760, %v5992_v26  ;;  %v6980_v40 = vand.u32 4294901760, %v5996_v37 }
 0x204   : > { %6963 = vst [vmem:[#allocation40_spill] sm:$0xff] %v6231_v11  ;;  %v6255_v11 = vpack.c.bf16 %v6974_v43, %v6973_v63  ;;  %v6981_v35 = vand.u32 4294901760, %v6000_v36  ;;  %v6273_v63 = vpack.c.bf16 %v2322_v14, %v2310_v10  ;;  %v6275_v43 = vpack.c.bf16 %v1681_v13, %v1669_v24 }
 0x205   : > { %6972 = vst [vmem:[#allocation43_spill] sm:$0xff] %v6249_v33  ;;  %v6261_v41 = vpack.c.bf16 %v6977_v8, %v6976_v7  ;;  %v6267_v27 = vpack.c.bf16 %v6980_v40, %v6979_v6  ;;  %v4153_v7 = vld [vmem:[%s6821_s4] ss:$0 sm:$0xff] }
 0x206   : > { %6975 = vst [vmem:[#allocation44_spill] sm:$0xff] %v6255_v11  ;;  %v6271_v33 = vpack.c.bf16 %v1675_v29, %v6981_v35  ;;  %v6277_v11 = vpack.c.bf16 %v2328_v12, %v2316_v18  ;;  %v7022_v24 = vld [vmem:[#allocation38_spill] sm:$0xff] }
 0x207   : > { %6978 = vst [vmem:[#allocation45_spill] sm:$0xff] %v6261_v41 }
 0x20a   : > { %v7025_v13 = vld [vmem:[#allocation41_spill] sm:$0xff] }
 0x276   : > { %v940_v62 = vpop.f32.mrb[2].mxu0 }
 0x277   : > { %v4386_v38 = vpop.f32.mrb[3].mxu0  ;;  %v941_v8 = vadd.f32 %v4153_v7, %v940_v62  ;;  %v1406_v62 = vld [vmem:[#allocation8 + $0x28] sm:$0xff]  ;;  %v1413_v7 = vld [vmem:[#allocation8 + $0x60] sm:$0xff] }
 0x2ae   : > { %v1394_v41 = vpop.f32.mrb[0].mxu1 }
 0x2af   : > { %v5066_v21 = vadd.f32 %v1394_v41, %v941_v8  ;;  %v4481_v40 = vpop.f32.mrb[1].mxu1  ;;  %v7029_v41 = vld [vmem:[#allocation45_spill] sm:$0xff]  ;;  %v1405_v8 = vld [vmem:[#allocation8 + $0x20] sm:$0xff] }
 0x2b0   : > { %v1412_v40 = vld [vmem:[#allocation8 + $0x58] sm:$0xff] }
 0x2b1   : > { %vm1398_vm4 = vcmp.ge.f32.partialorder %v5066_v21, 0.0  ;;  %v1399_v6 = vmul.f32 0.2, %v5066_v21 }
 0x2b3   : > { %v1400_v38 = vsel %vm1398_vm4, %v5066_v21, %v1399_v6  ;;  %v6983_v21 = vmov 0.0   ;;  %v1407_v6 = vld [vmem:[#allocation8 + $0x30] sm:$0xff] }
 0x2b4   : > { %v1495_v29 = vsel %vm857_vm3, %v1400_v38, 0  ;;  %v1414_v38 = vld [vmem:[#allocation8 + $0x68] sm:$0xff] }
 0x2b5   : > { %v6283_v35 = vand.u32 4294901760, %v1495_v29 }
 0x2b7   : > { %v6286_v14 = vsub.f32 %v1495_v29, %v6283_v35  ;;  %v2791_v29 = vand.u32 4294901760, %v1406_v62 }
 0x2b9   : > { %v6289_v12 = vand.u32 4294901760, %v6286_v14 }
 0x2bb   : > { %6982 = vst [vmem:[#allocation46_spill] sm:$0xff] %v6289_v12  ;;  %v1581_v18 = vsub.f32 %v6286_v14, %v6289_v12 }
 0x2bd   : > { %v6293_v10 = vand.u32 4294901760, %v1581_v18  ;;  %v2795_v18 = vand.u32 4294901760, %v1413_v7 }
 0x2bf   : > { %1583 = vmatmul.mubr.f32.vlgmr.msra.gmra.mrb[4].mxu0 %v6293_v10  ;;  %2230 = vmatmul.mubr.f32.vlgmr.msra.gmra.mrb[2].mxu1 %v6293_v10 }
 0x2c0   : > { %4723 = vmatpush1.bf16.msra.mxu0 %v6073_v9  ;;  %4819 = vmatpush1.bf16.msra.mxu1 %v6075_v20  ;;  %v6984_v9 = vld [vmem:[#allocation34_spill] sm:$0xff]  ;;  %v6987_v20 = vpack.c.bf16 %v5949_v59, %v5947_v58  ;;  %v6993_v58 = vpack.c.bf16 %v5980_v16, %v5978_v15  ;;  %v6994_v59 = vpack.c.bf16 %v5985_v19, %v5983_v17  ;;  %v7006_v16 = vld [vmem:[#allocation19_spill] sm:$0xff]  ;;  %v7007_v17 = vld [vmem:[#allocation20_spill] sm:$0xff] }
 0x2c1   : > { %4725 = vmatprep.subr.bf16.mxu0 %v6090_v56  ;;  %4821 = vmatprep.subr.bf16.mxu1 %v6102_v32  ;;  %v6985_v32 = vpack.c.bf16 %v5940_v54, %v5938_v51  ;;  %v6988_v56 = vpack.c.bf16 %v5953_v61, %v5951_v60  ;;  %v6989_v51 = vpack.c.bf16 %v5963_v49, %v5961_v46  ;;  %v7005_v15 = vld [vmem:[#allocation18_spill] sm:$0xff]  ;;  %v7008_v19 = vld [vmem:[#allocation21_spill] sm:$0xff] }
 0x2c2   : > { %1733 = vmatprep.mubr.f32.mxu0 %v6983_v21  ;;  %2380 = vmatprep.mubr.f32.mxu1 %v6983_v21  ;;  %v6990_v54 = vpack.c.bf16 %v5967_v53, %v5965_v52  ;;  %v6995_v60 = vpack.c.bf16 %v5990_v23, %v5988_v22  ;;  %v6996_v61 = vpack.c.bf16 %v5996_v37, %v5992_v26  ;;  %v7000_v53 = vld [vmem:[#allocation33_spill] sm:$0xff]  ;;  %v7009_v22 = vld [vmem:[#allocation22_spill] sm:$0xff]  ;;  %v7010_v23 = vld [vmem:[#allocation23_spill] sm:$0xff] }
 0x2c3   : > { %v6997_v46 = vpack.c.bf16 %v6002_v42, %v6000_v36  ;;  %v6998_v49 = vpack.c.bf16 %v6009_v45, %v6007_v44  ;;  %v6999_v52 = vpack.c.bf16 %v6017_v50, %v6013_v48  ;;  %v7011_v26 = vld [vmem:[#allocation24_spill] sm:$0xff]  ;;  %v7012_v37 = vld [vmem:[#allocation25_spill] sm:$0xff]  ;;  %v7013_v36 = vld [vmem:[#allocation26_spill] sm:$0xff] }
 0x2c4   : > { %4727 = vmatpush1.bf16.msra.mxu0 %v6109_v47  ;;  %4823 = vmatpush1.bf16.msra.mxu1 %v6118_v1  ;;  %v6986_v1 = vpack.c.bf16 %v5944_v57, %v5942_v55  ;;  %v6991_v55 = vpack.c.bf16 %v5971_v3, %v5969_v2  ;;  %v6992_v57 = vpack.c.bf16 %v5975_v5, %v5973_v4  ;;  %v7001_v2 = vld [vmem:[#allocation32_spill] sm:$0xff]  ;;  %v7004_v5 = vld [vmem:[#allocation17_spill] sm:$0xff]  ;;  %v7014_v42 = vld [vmem:[#allocation27_spill] sm:$0xff] }
 0x2c5   : > { %4729 = vmatprep.subr.bf16.mxu0 %v6123_v39  ;;  %4825 = vmatprep.subr.bf16.mxu1 %v6138_v25  ;;  %v7002_v3 = vpack.c.bf16 %v7000_v53, %v7001_v2  ;;  %v7003_v4 = vld [vmem:[#allocation16_spill] sm:$0xff]  ;;  %v7016_v45 = vld [vmem:[#allocation29_spill] sm:$0xff]  ;;  %v7017_v48 = vld [vmem:[#allocation30_spill] sm:$0xff] }
 0x2c6   : > { %v7015_v44 = vld [vmem:[#allocation28_spill] sm:$0xff]  ;;  %v7018_v50 = vld [vmem:[#allocation31_spill] sm:$0xff]  ;;  %v7021_v25 = vld [vmem:[#allocation37_spill] sm:$0xff] }
 0x2c7   : > { %v7019_v47 = vld [vmem:[#allocation35_spill] sm:$0xff]  ;;  %v7020_v39 = vld [vmem:[#allocation36_spill] sm:$0xff] }
 0x2c8   : > { %4731 = vmatpush1.bf16.msra.mxu0 %v6149_v0  ;;  %4827 = vmatpush1.bf16.msra.mxu1 %v6984_v9  ;;  %v7023_v0 = vld [vmem:[#allocation39_spill] sm:$0xff]  ;;  %v2793_v9 = vand.u32 4294901760, %v1405_v8 }
 0x2c9   : > { %4733 = vmatprep.subr.bf16.mxu0 %v6161_v28  ;;  %4829 = vmatprep.subr.bf16.mxu1 %v6169_v30  ;;  %v7024_v30 = vld [vmem:[#allocation40_spill] sm:$0xff]  ;;  %v7027_v28 = vld [vmem:[#allocation43_spill] sm:$0xff] }
 0x2cc   : > { %4735 = vmatpush1.bf16.msra.mxu0 %v4734_v34  ;;  %4831 = vmatpush1.bf16.msra.mxu1 %v4830_v31  ;;  %v7026_v31 = vld [vmem:[#allocation42_spill] sm:$0xff]  ;;  %v7028_v34 = vld [vmem:[#allocation44_spill] sm:$0xff] }
 0x2cd   : > { %4737 = vmatprep.subr.bf16.mxu0 %v6985_v32  ;;  %4833 = vmatprep.subr.bf16.mxu1 %v6986_v1  ;;  %v2797_v32 = vand.u32 4294901760, %v1412_v40  ;;  %v3442_v1 = vand.u32 4294901760, %v1414_v38 }
 0x2cf   : > { %1735 = vmatmul.mubr.f32.vlgmr.msra.gmra.mrb[4].mxu0 %v6283_v35  ;;  %2382 = vmatmul.mubr.f32.vlgmr.msra.gmra.mrb[2].mxu1 %v6283_v35  ;;  %v6423_v53 = vsub.f32 %v1412_v40, %v2797_v32 }
 0x2d0   : > { %4739 = vmatpush1.bf16.msra.mxu0 %v6987_v20  ;;  %4835 = vmatpush1.bf16.msra.mxu1 %v6988_v56  ;;  %v1419_v20 = vld [vmem:[#allocation8 + $0x90] sm:$0xff]  ;;  %v1426_v56 = vld [vmem:[#allocation8 + $0xc8] sm:$0xff] }
 0x2d1   : > { %4741 = vmatprep.subr.bf16.mxu0 %v6989_v51  ;;  %4837 = vmatprep.subr.bf16.mxu1 %v6990_v54 }
 0x2d2   : > { %1837 = vmatprep.mubr.f32.mxu0 %v6983_v21  ;;  %2484 = vmatprep.mubr.f32.mxu1 %v6983_v21 }
 0x2d4   : > { %4743 = vmatpush1.bf16.msra.mxu0 %v6991_v55  ;;  %4839 = vmatpush1.bf16.msra.mxu1 %v6992_v57  ;;  %v1421_v55 = vld [vmem:[#allocation8 + $0xa0] sm:$0xff]  ;;  %v1428_v57 = vld [vmem:[#allocation8 + $0xd8] sm:$0xff] }
 0x2d5   : > { %4745 = vmatprep.subr.bf16.mxu0 %v6993_v58  ;;  %4841 = vmatprep.subr.bf16.mxu1 %v6994_v59  ;;  %v6415_v58 = vsub.f32 %v1406_v62, %v2791_v29  ;;  %v6417_v59 = vsub.f32 %v1413_v7, %v2795_v18  ;;  %v1455_v62 = vld [vmem:[#allocation8 + $0x1b0] sm:$0xff] }
 0x2d8   : > { %4747 = vmatpush1.bf16.msra.mxu0 %v6995_v60  ;;  %4843 = vmatpush1.bf16.msra.mxu1 %v6996_v61  ;;  %v2801_v60 = vand.u32 4294901760, %v1419_v20  ;;  %v2805_v61 = vand.u32 4294901760, %v1426_v56 }
 0x2d9   : > { %4749 = vmatprep.subr.bf16.mxu0 %v6997_v46  ;;  %4845 = vmatprep.subr.bf16.mxu1 %v6998_v49  ;;  %v1434_v46 = vld [vmem:[#allocation8 + $0x108] sm:$0xff]  ;;  %v1441_v49 = vld [vmem:[#allocation8 + $0x140] sm:$0xff] }
 0x2da   : > { %v6445_v7 = vsub.f32 %v1426_v56, %v2805_v61 }
 0x2dc   : > { %4751 = vmatpush1.bf16.msra.mxu0 %v6999_v52  ;;  %4847 = vmatpush1.bf16.msra.mxu1 %v7002_v3  ;;  %v6421_v52 = vsub.f32 %v1405_v8, %v2793_v9  ;;  %v1433_v3 = vld [vmem:[#allocation8 + $0x100] sm:$0xff] }
 0x2dd   : > { %4753 = vmatprep.subr.bf16.mxu0 %v7003_v4  ;;  %4849 = vmatprep.subr.bf16.mxu1 %v7004_v5 }
 0x2df   : > { %1840 = vmatmul.mubr.f32.vlgmr.msra.gmra.mrb[4].mxu0 %v6286_v14  ;;  %2487 = vmatmul.mubr.f32.vlgmr.msra.gmra.mrb[2].mxu1 %v6286_v14 }
 0x2e0   : > { %4755 = vmatpush1.bf16.msra.mxu0 %v7005_v15  ;;  %4851 = vmatpush1.bf16.msra.mxu1 %v7006_v16 }
 0x2e1   : > { %4757 = vmatprep.subr.bf16.mxu0 %v7007_v17  ;;  %4853 = vmatprep.subr.bf16.mxu1 %v7008_v19 }
 0x2e2   : > { %1926 = vmatprep.mubr.f32.mxu0 %v6983_v21  ;;  %2573 = vmatprep.mubr.f32.mxu1 %v6983_v21 }
 0x2e4   : > { %4759 = vmatpush1.bf16.msra.mxu0 %v7009_v22  ;;  %4855 = vmatpush1.bf16.msra.mxu1 %v7010_v23 }
 0x2e5   : > { %4761 = vmatprep.subr.bf16.mxu0 %v7011_v26  ;;  %4857 = vmatprep.subr.bf16.mxu1 %v7012_v37 }
 0x2e8   : > { %4763 = vmatpush1.bf16.msra.mxu0 %v7013_v36  ;;  %4859 = vmatpush1.bf16.msra.mxu1 %v7014_v42 }
 0x2e9   : > { %4765 = vmatprep.subr.bf16.mxu0 %v7015_v44  ;;  %4861 = vmatprep.subr.bf16.mxu1 %v7016_v45 }
 0x2ec   : > { %4767 = vmatpush1.bf16.msra.mxu0 %v7017_v48  ;;  %4863 = vmatpush1.bf16.msra.mxu1 %v7018_v50 }
 0x2ed   : > { %4769 = vmatprep.subr.bf16.mxu0 %v7019_v47  ;;  %4865 = vmatprep.subr.bf16.mxu1 %v7020_v39  ;;  %v1442_v47 = vld [vmem:[#allocation8 + $0x148] sm:$0xff] }
 0x2ef   : > { %1930 = vmatmul.mubr.f32.vlgmr.msra.gmra.mrb[4].mxu0 %v6289_v12  ;;  %2577 = vmatmul.mubr.f32.vlgmr.msra.gmra.mrb[2].mxu1 %v6289_v12 }
 0x2f0   : > { %4771 = vmatpush1.bf16.msra.mxu0 %v7021_v25  ;;  %4867 = vmatpush1.bf16.msra.mxu1 %v7022_v24  ;;  %v2807_v24 = vand.u32 4294901760, %v1434_v46 }
 0x2f1   : > { %4773 = vmatprep.subr.bf16.mxu0 %v7023_v0  ;;  %4869 = vmatprep.subr.bf16.mxu1 %v7024_v30  ;;  %v2811_v0 = vand.u32 4294901760, %v1441_v49 }
 0x2f2   : > { %2048 = vmatprep.mubr.f32.mxu0 %v6983_v21  ;;  %2695 = vmatprep.mubr.f32.mxu1 %v6983_v21 }
 0x2f4   : > { %4775 = vmatpush1.bf16.msra.mxu0 %v7025_v13  ;;  %4871 = vmatpush1.bf16.msra.mxu1 %v7026_v31  ;;  %v6441_v13 = vpack.c.bf16 %v2805_v61, %v2801_v60  ;;  %v6443_v31 = vsub.f32 %v1419_v20, %v2801_v60 }
 0x2f5   : > { %4777 = vmatprep.subr.bf16.mxu0 %v7027_v28  ;;  %4873 = vmatprep.subr.bf16.mxu1 %v7028_v34  ;;  %v2809_v28 = vand.u32 4294901760, %v1433_v3 }
 0x2f8   : > { %4779 = vmatpush1.bf16.msra.mxu0 %v7029_v41  ;;  %4875 = vmatpush1.bf16.msra.mxu1 %v6267_v27  ;;  %v1420_v27 = vld [vmem:[#allocation8 + $0x98] sm:$0xff] }
 0x2f9   : > { %4781 = vmatprep.subr.bf16.mxu0 %v6271_v33  ;;  %4877 = vmatprep.subr.bf16.mxu1 %v6273_v63  ;;  %v1427_v33 = vld [vmem:[#allocation8 + $0xd0] sm:$0xff]  ;;  %v3439_v63 = vand.u32 4294901760, %v1407_v6  ;;  %v2799_v51 = vand.u32 4294901760, %v1420_v27  ;;  %v1448_v41 = vld [vmem:[#allocation8 + $0x178] sm:$0xff] }
 0x2fa   : > { %v2803_v54 = vand.u32 4294901760, %v1427_v33 }
 0x2fb   : > { %v6425_v2 = vpack.c.bf16 %v3442_v1, %v3439_v63  ;;  %v6435_v25 = vsub.f32 %v1420_v27, %v2799_v51  ;;  %v6901_v27 = vand.u32 4294901760, %v6415_v58 }
 0x2fc   : > { %4783 = vmatpush1.bf16.msra.mxu0 %v6275_v43  ;;  %4879 = vmatpush1.bf16.msra.mxu1 %v6277_v11  ;;  %v6409_v11 = vpack.c.bf16 %v2795_v18, %v2791_v29  ;;  %v6411_v43 = vpack.c.bf16 %v2797_v32, %v2793_v9  ;;  %v6433_v39 = vpack.c.bf16 %v2803_v54, %v2799_v51  ;;  %v1447_v29 = vld [vmem:[#allocation8 + $0x170] sm:$0xff]  ;;  %v1454_v18 = vld [vmem:[#allocation8 + $0x1a8] sm:$0xff]  ;;  %v2815_v9 = vand.u32 4294901760, %v1448_v41  ;;  %v1449_v51 = vld [vmem:[#allocation8 + $0x180] sm:$0xff] }
 0x2fd   : > { %4785 = vmatprep.subr.bf16.mxu0 %v7003_v4  ;;  %4881 = vmatprep.subr.bf16.mxu1 %v7004_v5  ;;  %v6427_v4 = vsub.f32 %v1407_v6, %v3439_v63  ;;  %v6429_v5 = vsub.f32 %v1414_v38, %v3442_v1  ;;  %v6439_v30 = vsub.f32 %v1427_v33, %v2803_v54  ;;  %v2819_v32 = vand.u32 4294901760, %v1455_v62 }
 0x2fe   : > { %v6457_v6 = vsub.f32 %v1434_v46, %v2807_v24  ;;  %v6459_v38 = vsub.f32 %v1441_v49, %v2811_v0  ;;  %v2817_v56 = vand.u32 4294901760, %v1447_v29  ;;  %v6895_v54 = vand.u32 4294901760, %v6421_v52 }
 0x2ff   : > { %2050 = vmatmul.mubr.f32.vlgmr.msra.gmra.mrb[4].mxu0 %v6283_v35  ;;  %2697 = vmatmul.mubr.f32.vlgmr.msra.gmra.mrb[2].mxu1 %v6283_v35  ;;  %v6894_v60 = vand.u32 4294901760, %v6427_v4  ;;  %v6893_v61 = vand.u32 4294901760, %v6429_v5  ;;  %v7030_v46 = vmov 0.0|0.0   ;;  %v6485_v49 = vpack.c.bf16 %v2819_v32, %v2815_v9 }
 0x300   : > { %4787 = vmatpush1.bf16.msra.mxu0 %v7005_v15  ;;  %4883 = vmatpush1.bf16.msra.mxu1 %v7006_v16  ;;  %v3445_v15 = vand.u32 4294901760, %v1421_v55  ;;  %v3448_v16 = vand.u32 4294901760, %v1428_v57 }
 0x301   : > { %4789 = vmatprep.subr.bf16.mxu0 %v7007_v17  ;;  %4885 = vmatprep.subr.bf16.mxu1 %v7008_v19  ;;  %v1440_v17 = vld [vmem:[#allocation8 + $0x138] sm:$0xff]  ;;  %v1435_v19 = vld [vmem:[#allocation8 + $0x110] sm:$0xff] }
 0x302   : > { %2136 = vmatprep.mubr.f32.mxu0 %v6983_v21  ;;  %2783 = vmatprep.mubr.f32.mxu1 %v6983_v21  ;;  %v3451_v34 = vand.u32 4294901760, %v1435_v19  ;;  %v6447_v8 = vpack.c.bf16 %v3448_v16, %v3445_v15  ;;  %v6449_v40 = vsub.f32 %v1421_v55, %v3445_v15  ;;  %v6495_v15 = vsub.f32 %v1455_v62, %v2819_v32 }
 0x304   : > { %4791 = vmatpush1.bf16.msra.mxu0 %v7009_v22  ;;  %4887 = vmatpush1.bf16.msra.mxu1 %v7010_v23  ;;  %v2813_v22 = vand.u32 4294901760, %v1440_v17  ;;  %v3454_v23 = vand.u32 4294901760, %v1442_v47  ;;  %v6473_v20 = vsub.f32 %v1435_v19, %v3451_v34 }
 0x305   : > { %4793 = vmatprep.subr.bf16.mxu0 %v7011_v26  ;;  %4889 = vmatprep.subr.bf16.mxu1 %v7012_v37  ;;  %v6451_v26 = vsub.f32 %v1428_v57, %v3448_v16  ;;  %v6455_v37 = vpack.c.bf16 %v2811_v0, %v2807_v24  ;;  %v6892_v57 = vand.u32 4294901760, %v6423_v53  ;;  %v3457_v16 = vand.u32 4294901760, %v1449_v51 }
 0x306   : > { %v6465_v33 = vpack.c.bf16 %v2813_v22, %v2809_v28  ;;  %v6469_v63 = vsub.f32 %v1440_v17, %v2813_v22  ;;  %v6471_v1 = vpack.c.bf16 %v3454_v23, %v3451_v34  ;;  %v6478_v55 = vsub.f32 %v1442_v47, %v3454_v23 }
 0x307   : > { %v2892_v47 = vsub.f32 %v6421_v52, %v6895_v54  ;;  %v6898_v24 = vand.u32 4294901760, %v6435_v25  ;;  %v6897_v0 = vand.u32 4294901760, %v6439_v30  ;;  %v3525_v22 = vsub.f32 %v6427_v4, %v6894_v60 }
 0x308   : > { %4795 = vmatpush1.bf16.msra.mxu0 %v7013_v36  ;;  %4891 = vmatpush1.bf16.msra.mxu1 %v7014_v42  ;;  %v6896_v36 = vand.u32 4294901760, %v6417_v59  ;;  %v6467_v42 = vsub.f32 %v1433_v3, %v2809_v28  ;;  %v6493_v3 = vsub.f32 %v1448_v41, %v2815_v9  ;;  %v2904_v28 = vsub.f32 %v6423_v53, %v6892_v57 }
 0x309   : > { %4797 = vmatprep.subr.bf16.mxu0 %v7015_v44  ;;  %4893 = vmatprep.subr.bf16.mxu1 %v7016_v45  ;;  %v2821_v44 = vand.u32 4294901760, %v1454_v18  ;;  %v1456_v45 = vld [vmem:[#allocation8 + $0x1b8] sm:$0xff]  ;;  %v3532_v34 = vsub.f32 %v6429_v5, %v6893_v61  ;;  %v6899_v23 = vand.u32 4294901760, %v6443_v31  ;;  %v6520_v41 = vsub.f32 %v1447_v29, %v2817_v56 }
 0x30a   : > { %v3460_v17 = vand.u32 4294901760, %v1456_v45  ;;  %v6524_v57 = vsub.f32 %v1449_v51, %v3457_v16  ;;  %v6900_v61 = vand.u32 4294901760, %v6445_v7  ;;  %v6902_v60 = vand.u32 4294901760, %v6449_v40 }
 0x30b   : > { %v6499_v19 = vpack.c.bf16 %v2821_v44, %v2817_v56  ;;  %v6522_v62 = vsub.f32 %v1454_v18, %v2821_v44  ;;  %v6903_v54 = vand.u32 4294901760, %v6451_v26  ;;  %v2893_v29 = vand.u32 4294901760, %v2892_v47 }
 0x30c   : > { %4799 = vmatpush1.bf16.msra.mxu0 %v7017_v48  ;;  %4895 = vmatpush1.bf16.msra.mxu1 %v7018_v50  ;;  %v2886_v48 = vsub.f32 %v6415_v58, %v6901_v27  ;;  %v2898_v50 = vsub.f32 %v6417_v59, %v6896_v36  ;;  %v6532_v36 = vpack.c.bf16 %v3460_v17, %v3457_v16  ;;  %v2905_v44 = vand.u32 4294901760, %v2904_v28 }
 0x30d   : > { %4897 = vmatprep.subr.bf16.mxu0 %v6409_v11  ;;  %4992 = vmatprep.subr.bf16.mxu1 %v7030_v46  ;;  %7031 = vst [vmem:[#allocation34_spill] sm:$0xff] %v6499_v19  ;;  %v2910_v18 = vsub.f32 %v6435_v25, %v6898_v24  ;;  %v2922_v56 = vsub.f32 %v6439_v30, %v6897_v0  ;;  %v3526_v51 = vand.u32 4294901760, %v3525_v22  ;;  %v6904_v0 = vand.u32 4294901760, %v6457_v6 }
 0x30e   : > { %v2887_v9 = vand.u32 4294901760, %v2886_v48  ;;  %v2899_v32 = vand.u32 4294901760, %v2898_v50  ;;  %7032 = vst [vmem:[#allocation33_spill] sm:$0xff] %v6532_v36  ;;  %v3533_v48 = vand.u32 4294901760, %v3532_v34  ;;  %v2916_v50 = vsub.f32 %v6443_v31, %v6899_v23 }
 0x30f   : > { %2138 = vmatmul.mubr.f32.vlgmr.msra.gmra.mrb[4].mxu0 %v6283_v35  ;;  %2785 = vmatmul.mubr.f32.vlgmr.msra.gmra.mrb[2].mxu1 %v6283_v35  ;;  %v6547_v16 = vsub.f32 %v1456_v45, %v3460_v17  ;;  %v2928_v28 = vsub.f32 %v6445_v7, %v6900_v61  ;;  %v3539_v22 = vsub.f32 %v6449_v40, %v6902_v60  ;;  %v6907_v45 = vand.u32 4294901760, %v6467_v42 }
 0x310   : > { %4899 = vmatpush1.bf16.msra.mxu0 %v6411_v43  ;;  %4994 = vmatpush3.bf16.msra.mxu1 %v6425_v2  ;;  %v4912_v47 = vpack.c.bf16 %v2899_v32, %v2887_v9  ;;  %v3546_v34 = vsub.f32 %v6451_v26, %v6903_v54  ;;  %v2911_v17 = vand.u32 4294901760, %v2910_v18  ;;  %v4914_v61 = vpack.c.bf16 %v2905_v44, %v2893_v29 }
 0x311   : > { %4901 = vmatprep.subr.bf16.mxu0 %v6433_v39  ;;  %4995 = vmatprep.subr.bf16.mxu1 %v7030_v46  ;;  %v5005_v27 = vpack.c.bf16 %v3533_v48, %v3526_v51  ;;  %v2923_v60 = vand.u32 4294901760, %v2922_v56  ;;  %v2917_v24 = vand.u32 4294901760, %v2916_v50  ;;  %v2934_v18 = vsub.f32 %v6457_v6, %v6904_v0 }
 0x312   : > { %2871 = vmatprep.mubr.f32.mxu0 %v6983_v21  ;;  %4498 = vmatprep.mubr.msk.f32.mxu1 %vm5445_vm0, %v6983_v21  ;;  %v7033_v54 = vand.u32 4294901760, %v6459_v38  ;;  %v2929_v29 = vand.u32 4294901760, %v2928_v28  ;;  %v3540_v44 = vand.u32 4294901760, %v3539_v22  ;;  %v3547_v56 = vand.u32 4294901760, %v3546_v34 }
 0x313   : > { %v2940_v51 = vsub.f32 %v6467_v42, %v6907_v45  ;;  %v7034_v48 = vand.u32 4294901760, %v6469_v63  ;;  %v7035_v0 = vand.u32 4294901760, %v6473_v20  ;;  %v4916_v22 = vpack.c.bf16 %v2923_v60, %v2911_v17 }
 0x314   : > { %4903 = vmatpush1.bf16.msra.mxu0 %v6441_v13  ;;  %4997 = vmatpush3.bf16.msra.mxu1 %v6447_v8  ;;  %v2946_v23 = vsub.f32 %v6459_v38, %v7033_v54  ;;  %v7036_v54 = vand.u32 4294901760, %v6478_v55  ;;  %v4918_v60 = vpack.c.bf16 %v2929_v29, %v2917_v24  ;;  %v5008_v17 = vpack.c.bf16 %v3547_v56, %v3540_v44 }
 0x315   : > { %4905 = vmatprep.subr.bf16.mxu0 %v6455_v37  ;;  %4998 = vmatprep.subr.bf16.mxu1 %v7030_v46  ;;  %v2952_v50 = vsub.f32 %v6469_v63, %v7034_v48  ;;  %v3553_v12 = vsub.f32 %v6473_v20, %v7035_v0  ;;  %v2935_v0 = vand.u32 4294901760, %v2934_v18  ;;  %v2941_v34 = vand.u32 4294901760, %v2940_v51 }
 0x316   : > { %v3560_v32 = vsub.f32 %v6478_v55, %v7036_v54  ;;  %v2947_v9 = vand.u32 4294901760, %v2946_v23  ;;  %v7037_v54 = vand.u32 4294901760, %v6493_v3  ;;  %v7039_v23 = vand.u32 4294901760, %v6520_v41 }
 0x317   : > { %v3554_v48 = vand.u32 4294901760, %v3553_v12  ;;  %v7041_v24 = vand.u32 4294901760, %v6524_v57  ;;  %v7042_v44 = vand.u32 4294901760, %v6547_v16 }
 0x318   : > { %4907 = vmatpush1.bf16.msra.mxu0 %v6465_v33  ;;  %5000 = vmatpush3.bf16.msra.mxu1 %v6471_v1  ;;  %v2958_v28 = vsub.f32 %v6493_v3, %v7037_v54  ;;  %v3561_v45 = vand.u32 4294901760, %v3560_v32  ;;  %v2964_v18 = vsub.f32 %v6520_v41, %v7039_v23  ;;  %v7040_v54 = vand.u32 4294901760, %v6522_v62 }
 0x319   : > { %4909 = vmatprep.subr.bf16.mxu0 %v6485_v49  ;;  %5001 = vmatprep.subr.bf16.mxu1 %v7030_v46  ;;  %v3567_v29 = vsub.f32 %v6524_v57, %v7041_v24  ;;  %v4920_v12 = vpack.c.bf16 %v2947_v9, %v2935_v0  ;;  %v4934_v0 = vpack.c.bf16 %v6445_v7, %v6443_v31 }
 0x31a   : > { %v2959_v32 = vand.u32 4294901760, %v2958_v28  ;;  %v2965_v51 = vand.u32 4294901760, %v2964_v18  ;;  %v4930_v28 = vpack.c.bf16 %v6423_v53, %v6421_v52  ;;  %v5023_v18 = vpack.c.bf16 %v6478_v55, %v6473_v20 }
 0x31b   : > { %v3568_v23 = vand.u32 4294901760, %v3567_v29  ;;  %v4942_v24 = vpack.c.bf16 %v6522_v62, %v6520_v41  ;;  %v5026_v29 = vpack.c.bf16 %v6547_v16, %v6524_v57 }
 0x31c   : > { %4911 = vmatpush1.bf16.msra.mxu0 %v6499_v19  ;;  %5003 = vmatpush3.bf16.msra.mxu1 %v6532_v36  ;;  %v7038_v19 = vand.u32 4294901760, %v6495_v15 }
 0x31d   : > { %4913 = vmatprep.subr.bf16.mxu0 %v4912_v47  ;;  %5004 = vmatprep.subr.bf16.mxu1 %v7030_v46  ;;  %v2953_v47 = vand.u32 4294901760, %v2952_v50 }
 0x31e   : > { %v2970_v36 = vsub.f32 %v6495_v15, %v7038_v19  ;;  %v2976_v19 = vsub.f32 %v6522_v62, %v7040_v54 }
 0x31f   : > { %2877 = vmatmul.mubr.f32.vlgmr.msra.gmra.mrb[6].mxu0 %v6293_v10  ;;  %4499 = vmatmul.mubr.f32.vlgmr.msra.gmra.mrb[4].mxu1 %v6293_v10  ;;  %v3574_v10 = vsub.f32 %v6547_v16, %v7042_v44  ;;  %v7044_v44 = vand.u32 4294901760, %v6417_v59 }
 0x320   : > { %4915 = vmatpush1.bf16.msra.mxu0 %v4914_v61  ;;  %5006 = vmatpush3.bf16.msra.mxu1 %v5005_v27  ;;  %v2971_v56 = vand.u32 4294901760, %v2970_v36  ;;  %v4922_v27 = vpack.c.bf16 %v2953_v47, %v2941_v34  ;;  %v5011_v61 = vpack.c.bf16 %v3561_v45, %v3554_v48  ;;  %v2977_v50 = vand.u32 4294901760, %v2976_v19 }
 0x321   : > { %4917 = vmatprep.subr.bf16.mxu0 %v4916_v22  ;;  %5007 = vmatprep.subr.bf16.mxu1 %v7030_v46  ;;  %v3575_v54 = vand.u32 4294901760, %v3574_v10  ;;  %v4928_v45 = vpack.c.bf16 %v6417_v59, %v6415_v58  ;;  %v5017_v34 = vpack.c.bf16 %v6429_v5, %v6427_v4  ;;  %v4932_v48 = vpack.c.bf16 %v6439_v30, %v6435_v25 }
 0x322   : > { %3027 = vmatprep.mubr.f32.mxu0 %v6983_v21  ;;  %4517 = vmatprep.mubr.msk.f32.mxu1 %vm5445_vm0, %v6983_v21  ;;  %v4924_v22 = vpack.c.bf16 %v2971_v56, %v2959_v32  ;;  %v4926_v36 = vpack.c.bf16 %v2977_v50, %v2965_v51  ;;  %v4938_v47 = vpack.c.bf16 %v6469_v63, %v6467_v42  ;;  %v7046_v32 = vld [vmem:[#allocation33_spill] sm:$0xff]  ;;  %v7047_v56 = vand.u32 4294901760, %v6421_v52 }
 0x323   : > { %v5014_v9 = vpack.c.bf16 %v3575_v54, %v3568_v23  ;;  %v4940_v19 = vpack.c.bf16 %v6495_v15, %v6493_v3  ;;  %v7049_v51 = vand.u32 4294901760, %v6427_v4  ;;  %v7050_v50 = vand.u32 4294901760, %v6429_v5 }
 0x324   : > { %4919 = vmatpush1.bf16.msra.mxu0 %v4918_v60  ;;  %5009 = vmatpush3.bf16.msra.mxu1 %v5008_v17  ;;  %v5020_v60 = vpack.c.bf16 %v6451_v26, %v6449_v40  ;;  %v4936_v17 = vpack.c.bf16 %v6459_v38, %v6457_v6  ;;  %v7052_v59 = vand.u32 4294901760, %v6439_v30  ;;  %v7054_v52 = vand.u32 4294901760, %v6443_v31 }
 0x325   : > { %4921 = vmatprep.subr.bf16.mxu0 %v4920_v12  ;;  %5010 = vmatprep.subr.bf16.mxu1 %v7030_v46  ;;  %v7045_v12 = vld [vmem:[#allocation34_spill] sm:$0xff]  ;;  %v5041_v23 = vpack.c.bf16 %v7050_v50, %v7049_v51  ;;  %v7056_v5 = vand.u32 4294901760, %v6449_v40  ;;  %v7059_v30 = vand.u32 4294901760, %v6459_v38  ;;  %v7060_v31 = vand.u32 4294901760, %v6467_v42 }
 0x326   : > { %v7064_v38 = vand.u32 4294901760, %v6493_v3  ;;  %v7066_v42 = vand.u32 4294901760, %v6520_v41 }
 0x328   : > { %4923 = vmatpush1.bf16.msra.mxu0 %v4922_v27  ;;  %5012 = vmatpush3.bf16.msra.mxu1 %v5011_v61  ;;  %v7048_v27 = vand.u32 4294901760, %v6423_v53  ;;  %v7055_v53 = vand.u32 4294901760, %v6445_v7  ;;  %v7061_v7 = vand.u32 4294901760, %v6469_v63  ;;  %v7067_v63 = vand.u32 4294901760, %v6522_v62 }
 0x329   : > { %4925 = vmatprep.subr.bf16.mxu0 %v4924_v22  ;;  %5013 = vmatprep.subr.bf16.mxu1 %v7030_v46  ;;  %v7053_v22 = vld [vmem:[#allocation46_spill] sm:$0xff] }
 0x32a   : > { %v4962_v61 = vpack.c.bf16 %v7048_v27, %v7047_v56  ;;  %v4966_v4 = vpack.c.bf16 %v7055_v53, %v7054_v52  ;;  %v4970_v40 = vpack.c.bf16 %v7061_v7, %v7060_v31 }
 0x32c   : > { %4927 = vmatpush1.bf16.msra.mxu0 %v4926_v36  ;;  %5015 = vmatpush3.bf16.msra.mxu1 %v5014_v9  ;;  %v7057_v36 = vand.u32 4294901760, %v6451_v26  ;;  %v7062_v26 = vand.u32 4294901760, %v6473_v20  ;;  %v7068_v20 = vand.u32 4294901760, %v6524_v57 }
 0x32d   : > { %4929 = vmatprep.subr.bf16.mxu0 %v4928_v45  ;;  %5016 = vmatprep.subr.bf16.mxu1 %v7030_v46 }
 0x32e   : > { %v5044_v9 = vpack.c.bf16 %v7057_v36, %v7056_v5 }
 0x32f   : > { %3029 = vmatmul.mubr.f32.vlgmr.msra.gmra.mrb[6].mxu0 %v6283_v35  ;;  %4518 = vmatmul.mubr.f32.vlgmr.msra.gmra.mrb[4].mxu1 %v6283_v35 }
 0x330   : > { %4931 = vmatpush1.bf16.msra.mxu0 %v4930_v28  ;;  %5018 = vmatpush3.bf16.msra.mxu1 %v5017_v34  ;;  %v7063_v28 = vand.u32 4294901760, %v6478_v55  ;;  %v7065_v34 = vand.u32 4294901760, %v6495_v15  ;;  %v7069_v55 = vand.u32 4294901760, %v6547_v16 }
 0x331   : > { %4933 = vmatprep.subr.bf16.mxu0 %v4932_v48  ;;  %5019 = vmatprep.subr.bf16.mxu1 %v7030_v46 }
 0x332   : > { %3131 = vmatprep.mubr.f32.mxu0 %v6983_v21  ;;  %4536 = vmatprep.mubr.msk.f32.mxu1 %vm5445_vm0, %v6983_v21  ;;  %v4972_v48 = vpack.c.bf16 %v7065_v34, %v7064_v38 }
 0x334   : > { %4935 = vmatpush1.bf16.msra.mxu0 %v4934_v0  ;;  %5021 = vmatpush3.bf16.msra.mxu1 %v5020_v60  ;;  %v4974_v0 = vpack.c.bf16 %v7067_v63, %v7066_v42  ;;  %v5050_v60 = vpack.c.bf16 %v7069_v55, %v7068_v20 }
 0x335   : > { %4937 = vmatprep.subr.bf16.mxu0 %v4936_v17  ;;  %5022 = vmatprep.subr.bf16.mxu1 %v7030_v46 }
 0x338   : > { %4939 = vmatpush1.bf16.msra.mxu0 %v4938_v47  ;;  %5024 = vmatpush3.bf16.msra.mxu1 %v5023_v18 }
 0x339   : > { %4941 = vmatprep.subr.bf16.mxu0 %v4940_v19  ;;  %5025 = vmatprep.subr.bf16.mxu1 %v7030_v46 }
 0x33c   : > { %4943 = vmatpush1.bf16.msra.mxu0 %v4942_v24  ;;  %5027 = vmatpush3.bf16.msra.mxu1 %v5026_v29 }
 0x33d   : > { %4945 = vmatprep.subr.bf16.mxu0 %v6409_v11  ;;  %5028 = vmatprep.subr.bf16.mxu1 %v7030_v46 }
 0x33f   : > { %3134 = vmatmul.mubr.f32.vlgmr.msra.gmra.mrb[6].mxu0 %v6286_v14  ;;  %4537 = vmatmul.mubr.f32.vlgmr.msra.gmra.mrb[4].mxu1 %v6286_v14  ;;  %v7043_v14 = vand.u32 4294901760, %v6415_v58  ;;  %v7051_v58 = vand.u32 4294901760, %v6435_v25  ;;  %v7058_v25 = vand.u32 4294901760, %v6457_v6  ;;  %v5047_v6 = vpack.c.bf16 %v7063_v28, %v7062_v26 }
 0x340   : > { %4947 = vmatpush1.bf16.msra.mxu0 %v6411_v43  ;;  %5030 = vmatpush3.bf16.msra.mxu1 %v6425_v2 }
 0x341   : > { %4949 = vmatprep.subr.bf16.mxu0 %v6433_v39  ;;  %5031 = vmatprep.subr.bf16.mxu1 %v7030_v46  ;;  %v4960_v10 = vpack.c.bf16 %v7044_v44, %v7043_v14  ;;  %v4964_v54 = vpack.c.bf16 %v7052_v59, %v7051_v58  ;;  %v4968_v45 = vpack.c.bf16 %v7059_v30, %v7058_v25 }
 0x342   : > { %3220 = vmatprep.mubr.f32.mxu0 %v6983_v21  ;;  %4555 = vmatprep.mubr.msk.f32.mxu1 %vm5445_vm0, %v6983_v21 }
 0x344   : > { %4951 = vmatpush1.bf16.msra.mxu0 %v6441_v13  ;;  %5033 = vmatpush3.bf16.msra.mxu1 %v6447_v8 }
 0x345   : > { %4953 = vmatprep.subr.bf16.mxu0 %v6455_v37  ;;  %5034 = vmatprep.subr.bf16.mxu1 %v7030_v46 }
 0x348   : > { %4955 = vmatpush1.bf16.msra.mxu0 %v6465_v33  ;;  %5036 = vmatpush3.bf16.msra.mxu1 %v6471_v1 }
 0x349   : > { %4957 = vmatprep.subr.bf16.mxu0 %v6485_v49  ;;  %5037 = vmatprep.subr.bf16.mxu1 %v7030_v46 }
 0x34c   : > { %4959 = vmatpush1.bf16.msra.mxu0 %v7045_v12  ;;  %5039 = vmatpush3.bf16.msra.mxu1 %v7046_v32 }
 0x34d   : > { %4961 = vmatprep.subr.bf16.mxu0 %v4960_v10  ;;  %5040 = vmatprep.subr.bf16.mxu1 %v7030_v46 }
 0x34f   : > { %3224 = vmatmul.mubr.f32.vlgmr.msra.gmra.mrb[6].mxu0 %v7053_v22  ;;  %4556 = vmatmul.mubr.f32.vlgmr.msra.gmra.mrb[4].mxu1 %v7053_v22 }
 0x350   : > { %4963 = vmatpush1.bf16.msra.mxu0 %v4962_v61  ;;  %5042 = vmatpush3.bf16.msra.mxu1 %v5041_v23 }
 0x351   : > { %4965 = vmatprep.subr.bf16.mxu0 %v4964_v54  ;;  %5043 = vmatprep.subr.bf16.mxu1 %v7030_v46 }
 0x352   : > { %3342 = vmatprep.mubr.f32.mxu0 %v6983_v21  ;;  %4574 = vmatprep.mubr.msk.f32.mxu1 %vm5445_vm0, %v6983_v21 }
 0x354   : > { %4967 = vmatpush1.bf16.msra.mxu0 %v4966_v4  ;;  %5045 = vmatpush3.bf16.msra.mxu1 %v5044_v9 }
 0x355   : > { %4969 = vmatprep.subr.bf16.mxu0 %v4968_v45  ;;  %5046 = vmatprep.subr.bf16.mxu1 %v7030_v46 }
 0x358   : > { %4971 = vmatpush1.bf16.msra.mxu0 %v4970_v40  ;;  %5048 = vmatpush3.bf16.msra.mxu1 %v5047_v6 }
 0x359   : > { %4973 = vmatprep.subr.bf16.mxu0 %v4972_v48  ;;  %5049 = vmatprep.subr.bf16.mxu1 %v7030_v46 }
 0x35c   : > { %4975 = vmatpush1.bf16.msra.mxu0 %v4974_v0  ;;  %5051 = vmatpush3.bf16.msra.mxu1 %v5050_v60 }
 0x35d   : > { %4977 = vmatprep.subr.bf16.mxu0 %v6409_v11  ;;  %5052 = vmatprep.subr.bf16.mxu1 %v7030_v46 }
 0x35f   : > { %3344 = vmatmul.mubr.f32.vlgmr.msra.gmra.mrb[6].mxu0 %v6283_v35  ;;  %4575 = vmatmul.mubr.f32.vlgmr.msra.gmra.mrb[4].mxu1 %v6283_v35 }
 0x360   : > { %4979 = vmatpush1.bf16.msra.mxu0 %v6411_v43  ;;  %5054 = vmatpush3.bf16.msra.mxu1 %v6425_v2 }
 0x361   : > { %4981 = vmatprep.subr.bf16.mxu0 %v6433_v39  ;;  %5055 = vmatprep.subr.bf16.mxu1 %v7030_v46  ;;  %v1457_v39 = vld [vmem:[%s6823_s6] sm:$0x7f] }
 0x362   : > { %3430 = vmatprep.mubr.f32.mxu0 %v6983_v21  ;;  %4593 = vmatprep.mubr.msk.f32.mxu1 %vm5445_vm0, %v6983_v21  ;;  %v1459_v21 = vlaneseq }
 0x364   : > { %4983 = vmatpush1.bf16.msra.mxu0 %v6441_v13  ;;  %5057 = vmatpush3.bf16.msra.mxu1 %v6447_v8  ;;  %v1460_v11 = vshrl.u32 %v1459_v21, 7 }
 0x365   : > { %4985 = vmatprep.subr.bf16.mxu0 %v6455_v37  ;;  %5058 = vmatprep.subr.bf16.mxu1 %v7030_v46 }
 0x366   : > { %v1461_v43 = vsub.s32 0, %v1460_v11  ;;  %v1469_v2 = vsub.s32 2, %v1460_v11  ;;  %v1465_v13 = vsub.s32 1, %v1460_v11  ;;  %v1473_v8 = vsub.s32 3, %v1460_v11 }
 0x367   : > { %v1477_v23 = vsub.s32 4, %v1460_v11  ;;  %v1485_v58 = vsub.s32 6, %v1460_v11  ;;  %v1481_v59 = vsub.s32 5, %v1460_v11 }
 0x368   : > { %4987 = vmatpush1.bf16.msra.mxu0 %v6465_v33  ;;  %5060 = vmatpush3.bf16.msra.mxu1 %v6471_v1  ;;  %v1462_v37 = vrot.slane %v1457_v39, %v1461_v43  ;;  %v1470_v33 = vrot.slane %v1457_v39, %v1469_v2  ;;  %v1466_v1 = vrot.slane %v1457_v39, %v1465_v13 }
 0x369   : > { %4989 = vmatprep.subr.bf16.mxu0 %v6485_v49  ;;  %5061 = vmatprep.subr.bf16.mxu1 %v7030_v46  ;;  %v1474_v57 = vrot.slane %v1457_v39, %v1473_v8  ;;  %v1478_v54 = vrot.slane %v1457_v39, %v1477_v23  ;;  %v1486_v22 = vrot.slane %v1457_v39, %v1485_v58 }
 0x36a   : > { %v1482_v52 = vrot.slane %v1457_v39, %v1481_v59 }
 0x36c   : > { %4991 = vmatpush1.bf16.msra.mxu0 %v7045_v12  ;;  %5063 = vmatpush3.bf16.msra.mxu1 %v7046_v32 }
 0x36f   : > { %3432 = vmatmul.mubr.f32.vlgmr.msra.gmra.mrb[6].mxu0 %v6283_v35  ;;  %4594 = vmatmul.mubr.f32.vlgmr.msra.gmra.mrb[4].mxu1 %v6283_v35 }
 0x3e2   : > { %v2139_v46 = vpop.f32.mrb[4].mxu0  ;;  %v2786_v49 = vpop.f32.mrb[2].mxu1 }
 0x3e3   : > { %v5067_v3 = vadd.f32 %v2139_v46, %v1462_v37  ;;  %v5069_v15 = vadd.f32 %v2786_v49, %v1470_v33  ;;  %v2141_v41 = vpop.f32.mrb[5].mxu0  ;;  %v2788_v35 = vpop.f32.mrb[3].mxu1 }
 0x3e4   : > { %v5068_v62 = vadd.f32 %v2141_v41, %v1466_v1  ;;  %v5070_v16 = vadd.f32 %v2788_v35, %v1474_v57 }
 0x3e5   : > { %v4154_v17 = vmul.f32 -1.442695, %v5067_v3  ;;  %v4156_v47 = vmul.f32 -1.442695, %v5069_v15 }
 0x3e6   : > { %v4155_v18 = vmul.f32 -1.442695, %v5068_v62  ;;  %v4157_v19 = vmul.f32 -1.442695, %v5070_v16 }
 0x3e7   : > { %5218 = vpow2.f32 %v4154_v17 }
 0x3e8   : > { %5220 = vpow2.f32 %v4156_v47 }
 0x3e9   : > { %5222 = vpow2.f32 %v4155_v18 }
 0x3ea   : > { %5224 = vpow2.f32 %v4157_v19 }
 0x3f1   : > { %v5219_v24 = vpop.eup %5218 }
 0x3f2   : > { %v5221_v29 = vpop.eup %5220  ;;  %v3996_v14 = vadd.f32 1.0, %v5219_v24 }
 0x3f3   : > { %v5223_v44 = vpop.eup %5222  ;;  %v3998_v10 = vadd.f32 1.0, %v5221_v29 }
 0x3f4   : > { %v5225_v12 = vpop.eup %5224  ;;  %5226 = vrcp.f32 %v3996_v14  ;;  %v3997_v32 = vadd.f32 1.0, %v5223_v44 }
 0x3f5   : > { %5228 = vrcp.f32 %v3998_v10  ;;  %v3999_v56 = vadd.f32 1.0, %v5225_v12 }
 0x3f6   : > { %5230 = vrcp.f32 %v3997_v32 }
 0x3f7   : > { %5232 = vrcp.f32 %v3999_v56 }
 0x3fe   : > { %v5227_v27 = vpop.eup %5226 }
 0x3ff   : > { %v5229_v61 = vpop.eup %5228  ;;  %4017 = vst [vmem:[%s6759_s12] sm:$0xff] %v5227_v27 }
 0x400   : > { %v5231_v51 = vpop.eup %5230  ;;  %4019 = vst [vmem:[%s6759_s12 + $0x10] sm:$0xff] %v5229_v61 }
 0x401   : > { %v5233_v50 = vpop.eup %5232  ;;  %4018 = vst [vmem:[%s6759_s12 + $0x8] sm:$0xff] %v5231_v51 }
 0x402   : > { %4020 = vst [vmem:[%s6759_s12 + $0x18] sm:$0xff] %v5233_v50 }
 0x442   : > { %v3433_v53 = vpop.f32.mrb[6].mxu0  ;;  %v3971_v4 = vpop.f32.mrb[4].mxu1 }
 0x443   : > { %v5071_v5 = vadd.f32 %v3433_v53, %v1478_v54  ;;  %v5073_v36 = vadd.f32 %v3971_v4, %v1486_v22  ;;  %v3435_v9 = vpop.f32.mrb[7].mxu0  ;;  %v4595_v25 = vpop.f32.mrb[5].mxu1 }
 0x444   : > { %v5072_v30 = vadd.f32 %v3435_v9, %v1482_v52 }
 0x445   : > { %v4158_v45 = vmul.f32 -1.442695, %v5071_v5  ;;  %v4160_v31 = vmul.f32 -1.442695, %v5073_v36 }
 0x446   : > { %v4159_v7 = vmul.f32 -1.442695, %v5072_v30 }
 0x447   : > { %5234 = vpow2.f32 %v4158_v45 }
 0x448   : > { %5236 = vpow2.f32 %v4160_v31 }
 0x449   : > { %5238 = vpow2.f32 %v4159_v7 }
 0x451   : > { %v5235_v40 = vpop.eup %5234 }
 0x452   : > { %v5237_v26 = vpop.eup %5236  ;;  %v4000_v28 = vadd.f32 1.0, %v5235_v40 }
 0x453   : > { %v5239_v6 = vpop.eup %5238  ;;  %v4002_v38 = vadd.f32 1.0, %v5237_v26 }
 0x454   : > { %5240 = vrcp.f32 %v4000_v28  ;;  %v4001_v34 = vadd.f32 1.0, %v5239_v6 }
 0x455   : > { %5242 = vrcp.f32 %v4002_v38 }
 0x456   : > { %5244 = vrcp.f32 %v4001_v34 }
 0x45e   : > { %v5241_v48 = vpop.eup %5240 }
 0x45f   : > { %v5243_v42 = vpop.eup %5242  ;;  %4021 = vst [vmem:[%s6759_s12 + $0x20] sm:$0xff] %v5241_v48 }
 0x460   : > { %v5245_v63 = vpop.eup %5244  ;;  %4024 = vst.msk [vmem:[%s6759_s12 + $0x30] sm:$0xff] %vm4023_vm5, %v5243_v42 }
 0x461   : > { %4022 = vst [vmem:[%s6759_s12 + $0x28] sm:$0xff] %v5245_v63 }
 0x462   : > { %5373 = shalt.err (!%p5370_p4)
}
 0x463   : > { %s5374_s15 = scalar_lea.hbm %s6771_s21, 896  ;;  %s5378_s13 = scalar_lea.hbm %s6824_s7, 1792 }
 0x464   : > { %p5375_p0 = scmp.ne.s32.totalorder %s6771_s21, %s5374_s15  ;;  %p5379_p11 = scmp.lt.u32.totalorder %s6771_s21, %s6824_s7 }
 0x465   : > { %p5380_p13 = scmp.lt.u32.totalorder %s5378_s13, %s5374_s15  ;;  %p5382_p10 = scmp.lt.u32.totalorder %s5374_s15, %s6771_s21 }
 0x466   : > { %p5376_p9 = pnand %p5375_p0, %p5633_p5 }
 0x467   : > { %p5381_p6 = por %p5380_p13, %p5379_p11 }
 0x468   : > { %p5377_p8 = pneg %p5376_p9 }
 0x469   : > { %p5383_p3 = por %p5382_p10, %p5381_p6 }
 0x46b   : > { %p5384_p7 = pnand %p5383_p3, %p5377_p8 }
 0x46d   : > { %5387 = shalt.err (!%p5384_p7)
}
 0x46e   : > { %5148 = dma.vmem_to_hbm [thread:$0]  (%p5633_p5), %s6773_s11, 896, %s6771_s21, %s4026_s16  }
 0x46f PF: > { %s7070_s29 = sld [smem:[#allocation15_spill]]  ;;  %s4052_s17 = sand.u32 1, %s5422_s24  }
 0x470   : > { %p7072_p2 = scmp.ge.s32.totalorder %s5434_s27, 2  ;;  %s4053_s18 = scalar_lea.sflag [#allocation4], %s4052_s17 }
 0x475   : > { %p7071_p12 = scmp.ne.s32.totalorder %s7070_s29, 0 }
 0x477   : > { %p5165_p1 = pnand %p7072_p2, %p7071_p12 }
 0x479   : > { %5417 = dma.done.wait (!%p5165_p1), %s4053_s18, 896  }
 0x47a   : > { %5419 = vsyncadd (!%p5165_p1), %s4053_s18, 4294966400  ;;  %p22_p4 = scmp.ge.s32.totalorder %s5619_s8, 4   ;;  %s7073_s24 = smov %s5426_s25 }
 0x47b   : > { %s7074_s25 = smov %s5430_s26  ;;  %s7075_s26 = smov %s5629_s19 }
 0x47c   : > { %s7076_s27 = smov %s5619_s8  ;;  %24 = sbr.rel (!%p22_p4) target bundleno = 7 (0x7), region = 105 }
 0x483   :  { %4058 = vsyncpa [#allocation3], 1 }
 0x484   :  { %4060 = vsyncpa [#allocation3 + $0x1], 1 }
 0x485   :  { %4061 = vsyncpa [#allocation6], 1 }
 0x486   :  { %4062 = vsyncpa [#allocation9], 1 }
 0x487   :  { %4063 = vsyncpa [#allocation4], 1 }
 0x488   :  { %4065 = vsyncpa [#allocation4 + $0x1], 1 }

</bundles_post_ra>
